<compile_context>
chip_gen: v6e
topology: v6e:2x2x1
jax: 0.10.0
libtpu: 0.0.40
codegen_flags: <defaults>
</compile_context>

<pallas_src>
import functools

import jax
import jax.numpy as jnp
from jax.experimental import pallas as pl
from jax.experimental.pallas import tpu as pltpu


def _pick_tile(dim, prefs=(512, 256, 128)):
    for p in prefs:
        if p <= dim and dim % p == 0:
            return p
    return dim


# --------------------------------------------------------------------------
# Kernel 1: fused LSTM chunk - bulk input projection + serial recurrence
# --------------------------------------------------------------------------
def _lstm_chunk_kernel(len_ref, x_ref, wih_ref, bih_ref, whh_ref,
                       h0_ref, c0_ref, *refs,
                       t_chunk, emit_outputs, masked, unroll):
    """One (batch_block, time_chunk) grid step.

    len_ref: (b_blk, 1) int32  true sequence lengths (used iff masked)
    x_ref:   (t_chunk, b_blk, H) bf16  embedded inputs for this chunk
    wih/bih/whh: input projection weights+bias, recurrent weights
    h0/c0:   (b_blk, H) f32   initial state (consumed at chunk 0 only)
    outputs: [out (t_chunk,b_blk,H)] , hn (b_blk,H), cn (b_blk,H)
    scratch: gx (t_chunk,b_blk,4H) f32, h/c carry (persist across chunks)
    """
    if emit_outputs:
        out_ref, hn_ref, cn_ref, gx_sc, h_sc, c_sc = refs
    else:
        out_ref = None
        hn_ref, cn_ref, gx_sc, h_sc, c_sc = refs

    s = pl.program_id(1)
    b_blk, H = h_sc.shape

    @pl.when(s == 0)
    def _():
        h_sc[...] = h0_ref[...]
        c_sc[...] = c0_ref[...]

    # Bulk input projection for the whole chunk: one MXU matmul, so the
    # precomputed-gates tensor never touches HBM.
    x2 = x_ref[...].reshape(t_chunk * b_blk, H)                     # bf16
    gx = jnp.dot(x2, wih_ref[...], preferred_element_type=jnp.float32)
    gx_sc[...] = (gx + bih_ref[...]).reshape(t_chunk, b_blk, 4 * H)

    # Loop-invariant loads hoisted off the serial critical path.
    whh = whh_ref[...]                                              # (H,4H) bf16
    if masked:
        rel_len = len_ref[...] - s * t_chunk                        # (b_blk,1)

    def step(t, carry):
        h, c = carry                                                # (b_blk,H) f32
        gates = gx_sc[t] + jnp.dot(h.astype(jnp.bfloat16), whh,
                                   preferred_element_type=jnp.float32)
        # PyTorch gate order: i, f, g, o (H=128 -> lane-aligned slices)
        i_g = jax.nn.sigmoid(gates[:, 0 * H:1 * H])
        f_g = jax.nn.sigmoid(gates[:, 1 * H:2 * H])
        g_g = jnp.tanh(gates[:, 2 * H:3 * H])
        o_g = jax.nn.sigmoid(gates[:, 3 * H:4 * H])
        c_new = f_g * c + i_g * g_g
        h_new = o_g * jnp.tanh(c_new)
        if masked:
            valid = t < rel_len                                     # (b_blk,1) bool
            if emit_outputs:
                out_ref[t] = jnp.where(valid, h_new, 0.0).astype(out_ref.dtype)
            h = jnp.where(valid, h_new, h)
            c = jnp.where(valid, c_new, c)
        else:
            if emit_outputs:
                out_ref[t] = h_new.astype(out_ref.dtype)
            h, c = h_new, c_new
        return (h, c)

    h, c = jax.lax.fori_loop(0, t_chunk, step, (h_sc[...], c_sc[...]),
                             unroll=unroll)
    h_sc[...] = h
    c_sc[...] = c

    @pl.when(s == pl.num_programs(1) - 1)
    def _():
        hn_ref[...] = h_sc[...]
        cn_ref[...] = c_sc[...]


def lstm_seq(x_tm, lengths_col, h0, c0, w_ih, b_ih, w_hh, *,
             t_chunk=8, b_blk=None, emit_outputs=True, masked=True,
             max_unroll=8):
    """x_tm: (S, B, H) time-major embedded inputs.

    Returns (out[:S], h_n, c_n) if emit_outputs else (h_n, c_n).
    Set b_blk=B//2 on v7x (B>=16) to shard the recurrence over both TCs.
    """
    S, B, H = x_tm.shape
    G = 4 * H
    if b_blk is None or B % b_blk:
        b_blk = B
    t_chunk = min(t_chunk, S)
    S_pad = ((S + t_chunk - 1) // t_chunk) * t_chunk
    if S_pad != S:
        x_tm = jnp.pad(x_tm, ((0, S_pad - S), (0, 0), (0, 0)))
        masked = True                      # padded steps must freeze the carry
    unroll = max(1, min(max_unroll, t_chunk))
    grid = (B // b_blk, S_pad // t_chunk)

    in_specs = [
        pl.BlockSpec((b_blk, 1), lambda b, s: (b, 0)),              # lengths
        pl.BlockSpec((t_chunk, b_blk, H), lambda b, s: (s, b, 0)),  # x chunk (bf16)
        pl.BlockSpec((H, G), lambda b, s: (0, 0)),                  # W_ih
        pl.BlockSpec((1, G), lambda b, s: (0, 0)),                  # bias
        pl.BlockSpec((H, G), lambda b, s: (0, 0)),                  # W_hh
        pl.BlockSpec((b_blk, H), lambda b, s: (b, 0)),              # h0
        pl.BlockSpec((b_blk, H), lambda b, s: (b, 0)),              # c0
    ]
    out_specs, out_shapes = [], []
    if emit_outputs:
        out_specs.append(pl.BlockSpec((t_chunk, b_blk, H), lambda b, s: (s, b, 0)))
        out_shapes.append(jax.ShapeDtypeStruct((S_pad, B, H), jnp.float32))
    out_specs += [pl.BlockSpec((b_blk, H), lambda b, s: (b, 0)),    # h_n (resident)
                  pl.BlockSpec((b_blk, H), lambda b, s: (b, 0))]    # c_n (resident)
    out_shapes += [jax.ShapeDtypeStruct((B, H), jnp.float32),
                   jax.ShapeDtypeStruct((B, H), jnp.float32)]

    res = pl.pallas_call(
        functools.partial(_lstm_chunk_kernel, t_chunk=t_chunk,
                          emit_outputs=emit_outputs, masked=masked,
                          unroll=unroll),
        out_shape=tuple(out_shapes),
        grid=grid,
        in_specs=in_specs,
        out_specs=tuple(out_specs),
        scratch_shapes=[pltpu.VMEM((t_chunk, b_blk, G), jnp.float32),  # gates
                        pltpu.VMEM((b_blk, H), jnp.float32),           # h carry
                        pltpu.VMEM((b_blk, H), jnp.float32)],          # c carry
        compiler_params=pltpu.CompilerParams(
            dimension_semantics=("parallel", "arbitrary"),
            vmem_limit_bytes=32 * 1024 * 1024),
    )(lengths_col.astype(jnp.int32),
      x_tm.astype(jnp.bfloat16),
      w_ih.astype(jnp.bfloat16),
      b_ih.astype(jnp.float32),
      w_hh.astype(jnp.bfloat16),
      h0.astype(jnp.float32),
      c0.astype(jnp.float32))

    if emit_outputs:
        out, hn, cn = res
        return out[:S], hn, cn
    hn, cn = res
    return hn, cn


# --------------------------------------------------------------------------
# Kernel 2: generator  (tm=B rows per time step, full-K contraction,
#                       batch-major logits written directly via out_spec)
# --------------------------------------------------------------------------
def _generator_kernel(x_ref, w_ref, b_ref, o_ref):
    o_ref[...] = (jnp.dot(x_ref[...], w_ref[...],
                          preferred_element_type=jnp.float32)
                  + b_ref[...]).astype(o_ref.dtype)


def generator(x_flat_tm, w_hv, bias, B, S, *, tn=512):
    """x_flat_tm: (S*B, H) time-major rows; w_hv: (H, V). Returns (B, S, V)."""
    _, H = x_flat_tm.shape
    V = w_hv.shape[1]
    tn = _pick_tile(V, (tn, 256, 128))
    n_vb = V // tn
    # Grid order (vocab_blocks, time): weight block stays VMEM-resident across
    # the inner time axis (fetched once per vocab block).
    grid = (n_vb, S)
    out = pl.pallas_call(
        _generator_kernel,
        out_shape=jax.ShapeDtypeStruct((B, S * V), jnp.float32),
        grid=grid,
        in_specs=[pl.BlockSpec((B, H), lambda j, i: (i, 0)),    # one time step
                  pl.BlockSpec((H, tn), lambda j, i: (0, j)),   # weight stripe
                  pl.BlockSpec((1, tn), lambda j, i: (0, j))],  # bias stripe
        # Batch-major layout folded into the out_spec -> no wrapper transpose.
        out_specs=pl.BlockSpec((B, tn), lambda j, i: (0, i * n_vb + j)),
        compiler_params=pltpu.CompilerParams(
            dimension_semantics=("parallel", "parallel"),
            vmem_limit_bytes=32 * 1024 * 1024),
    )(x_flat_tm.astype(jnp.bfloat16), w_hv.astype(jnp.bfloat16),
      bias.astype(jnp.float32))
    return out.reshape(B, S, V)       # free reshape: (B, S*V) -> (B, S, V)


# --------------------------------------------------------------------------
# Model: parameters + forward
# --------------------------------------------------------------------------
def init_params(key, src_vocab, tgt_vocab, hidden):
    ks = jax.random.split(key, 9)
    s = 0.1
    rnd = lambda k, shp: (jax.random.normal(k, shp, jnp.float32) * s)
    return {
        "embed_src": rnd(ks[0], (src_vocab, hidden)),
        "embed_tgt": rnd(ks[1], (tgt_vocab, hidden)),   # also generator weight (tied)
        "enc_w_ih": rnd(ks[2], (hidden, 4 * hidden)),
        "enc_w_hh": rnd(ks[3], (hidden, 4 * hidden)),
        "enc_b":    rnd(ks[4], (1, 4 * hidden)),
        "dec_w_ih": rnd(ks[5], (hidden, 4 * hidden)),
        "dec_w_hh": rnd(ks[6], (hidden, 4 * hidden)),
        "dec_b":    rnd(ks[7], (1, 4 * hidden)),
        "gen_b":    rnd(ks[8], (1, tgt_vocab)),
    }


def seq2seq_forward(params, src, src_lengths, tgt, dec_hidden=None, *, t_chunk=4):
    B, S_src = src.shape
    _, S_tgt = tgt.shape
    H = params["embed_src"].shape[1]

    # ---------------- encoder (final-state only; outputs unused, no attention)
    # TODO(synk): fuse this gather via PrefetchScalarGridSpec + pl.Element rows.
    x_enc = jnp.take(params["embed_src"], src.T, axis=0)            # (S,B,H)
    len_src = src_lengths.astype(jnp.int32)[:, None]                # (B,1)
    h0 = jnp.zeros((B, H), jnp.float32)
    c0 = jnp.zeros((B, H), jnp.float32)
    h_enc, c_enc = lstm_seq(x_enc, len_src, h0, c0,
                            params["enc_w_ih"], params["enc_b"],
                            params["enc_w_hh"],
                            t_chunk=t_chunk, emit_outputs=False, masked=True)

    if dec_hidden is None:
        dec_hidden = (h_enc, c_enc)

    # ---------------- decoder (all steps valid -> unmasked recurrence) -------
    x_dec = jnp.take(params["embed_tgt"], tgt.T, axis=0)            # (S_t,B,H)
    len_tgt = jnp.full((B, 1), S_tgt, jnp.int32)
    dec_out, h_dec, c_dec = lstm_seq(x_dec, len_tgt,
                                     dec_hidden[0], dec_hidden[1],
                                     params["dec_w_ih"], params["dec_b"],
                                     params["dec_w_hh"],
                                     t_chunk=t_chunk, emit_outputs=True,
                                     masked=False)

    # ---------------- generator (weight tied to decoder embedding) ----------
    # One-time XLA transpose of the tied embedding -> standard (K,N) MXU path
    # (no per-tile XLU transpose inside the kernel).
    w_gen = params["embed_tgt"].T                                   # (H, V)
    logits = generator(dec_out.reshape(S_tgt * B, H), w_gen,
                       params["gen_b"], B, S_tgt)                   # (B,S_t,V)
    return logits, (h_dec, c_dec)


# --------------------------------------------------------------------------
# Pure-JAX f32 reference (same math, no Pallas) for a sanity check
# --------------------------------------------------------------------------
def _lstm_seq_ref(x_seq, mask, h0, c0, w_ih, w_hh, b):
    H = h0.shape[1]

    def step(carry, inp):
        h, c = carry
        x_t, m_t = inp
        gates = x_t @ w_ih + h @ w_hh + b
        i_g = jax.nn.sigmoid(gates[:, 0 * H:1 * H])
        f_g = jax.nn.sigmoid(gates[:, 1 * H:2 * H])
        g_g = jnp.tanh(gates[:, 2 * H:3 * H])
        o_g = jax.nn.sigmoid(gates[:, 3 * H:4 * H])
        c_new = f_g * c + i_g * g_g
        h_new = o_g * jnp.tanh(c_new)
        out = m_t * h_new
        h = m_t * h_new + (1.0 - m_t) * h
        c = m_t * c_new + (1.0 - m_t) * c
        return (h, c), out

    (h, c), outs = jax.lax.scan(step, (h0, c0), (x_seq, mask))
    return outs, h, c


def seq2seq_forward_ref(params, src, src_lengths, tgt):
    B, S_src = src.shape
    _, S_tgt = tgt.shape
    H = params["embed_src"].shape[1]
    V_tgt = params["embed_tgt"].shape[0]
    src_emb = jnp.take(params["embed_src"], src.T, axis=0)
    t_idx = jnp.arange(S_src, dtype=jnp.int32)[:, None]
    mask_src = (t_idx < src_lengths[None, :]).astype(jnp.float32)[:, :, None]
    z = jnp.zeros((B, H), jnp.float32)
    _, h_enc, c_enc = _lstm_seq_ref(src_emb, mask_src, z, z,
                                    params["enc_w_ih"], params["enc_w_hh"],
                                    params["enc_b"])
    tgt_emb = jnp.take(params["embed_tgt"], tgt.T, axis=0)
    mask_tgt = jnp.ones((S_tgt, B, 1), jnp.float32)
    dec_out, h_dec, c_dec = _lstm_seq_ref(tgt_emb, mask_tgt, h_enc, c_enc,
                                          params["dec_w_ih"], params["dec_w_hh"],
                                          params["dec_b"])
    logits = (dec_out.reshape(S_tgt * B, H) @ params["embed_tgt"].T
              + params["gen_b"]).reshape(S_tgt, B, V_tgt).transpose(1, 0, 2)
    return logits, (h_dec, c_dec)


# --------------------------------------------------------------------------
if __name__ == "__main__":
    # H=128 keeps gate slices / stores lane-aligned; vocab=256 divides the
    # generator's 128/256-wide tiles; S=8 with t_chunk=4 exercises the grid.
    SRC_VOCAB, TGT_VOCAB, HIDDEN = 256, 256, 128
    B, S_SRC, S_TGT = 8, 8, 8

    key = jax.random.PRNGKey(0)
    k_par, k_src, k_tgt = jax.random.split(key, 3)
    params = init_params(k_par, SRC_VOCAB, TGT_VOCAB, HIDDEN)

    src = jax.random.randint(k_src, (B, S_SRC), 1, SRC_VOCAB, dtype=jnp.int32)
    tgt = jax.random.randint(k_tgt, (B, S_TGT), 1, TGT_VOCAB, dtype=jnp.int32)
    src_lengths = jnp.array([8, 5, 8, 3, 8, 8, 2, 8], dtype=jnp.int32)

    logits, (h_dec, c_dec) = seq2seq_forward(params, src, src_lengths, tgt,
                                             t_chunk=4)
    jax.block_until_ready((logits, h_dec, c_dec))

    ref_logits, (ref_h, ref_c) = seq2seq_forward_ref(params, src, src_lengths, tgt)
    assert logits.shape == (B, S_TGT, TGT_VOCAB)
    assert h_dec.shape == (B, HIDDEN) and c_dec.shape == (B, HIDDEN)
    assert jnp.allclose(logits, ref_logits, rtol=2e-2, atol=2e-2)
    assert jnp.allclose(h_dec, ref_h, rtol=2e-2, atol=2e-2)
    assert jnp.allclose(c_dec, ref_c, rtol=2e-2, atol=2e-2)

    print("KERNEL_OK")
</pallas_src>

<mosaic_0001>
module attributes {stable_mosaic.version = 11 : i64} {
  func.func @_lstm_chunk_kernel(%arg0: i32, %arg1: i32, %arg2: memref<8x1xi32, #tpu.memory_space<vmem>>, %arg3: memref<4x8x128xbf16, #tpu.memory_space<vmem>>, %arg4: memref<128x512xbf16, #tpu.memory_space<vmem>>, %arg5: memref<1x512xf32, #tpu.memory_space<vmem>>, %arg6: memref<128x512xbf16, #tpu.memory_space<vmem>>, %arg7: memref<8x128xf32, #tpu.memory_space<vmem>>, %arg8: memref<8x128xf32, #tpu.memory_space<vmem>>, %arg9: memref<8x128xf32, #tpu.memory_space<vmem>>, %arg10: memref<8x128xf32, #tpu.memory_space<vmem>>, %arg11: memref<4x8x512xf32, #tpu.memory_space<vmem>>, %arg12: memref<8x128xf32, #tpu.memory_space<vmem>>, %arg13: memref<8x128xf32, #tpu.memory_space<vmem>>) attributes {dimension_semantics = [#tpu.dimension_semantics<parallel>, #tpu.dimension_semantics<arbitrary>], iteration_bounds = array<i64: 1, 2>, scalar_prefetch = 0 : i64, scratch_operands = 3 : i64, tpu.core_type = #tpu.core_type<tc>, window_params = [{transform_indices = @transform_0, window_bounds = array<i64: 8, 1>}, {transform_indices = @transform_1, window_bounds = array<i64: 4, 8, 128>}, {pipeline_mode = #tpu.pipeline_mode<synchronous>, transform_indices = @transform_2, window_bounds = array<i64: 128, 512>}, {pipeline_mode = #tpu.pipeline_mode<synchronous>, transform_indices = @transform_3, window_bounds = array<i64: 1, 512>}, {pipeline_mode = #tpu.pipeline_mode<synchronous>, transform_indices = @transform_4, window_bounds = array<i64: 128, 512>}, {transform_indices = @transform_5, window_bounds = array<i64: 8, 128>}, {transform_indices = @transform_6, window_bounds = array<i64: 8, 128>}, {transform_indices = @transform_7, window_bounds = array<i64: 8, 128>}, {transform_indices = @transform_8, window_bounds = array<i64: 8, 128>}]} {
    %c0_i32 = arith.constant 0 : i32
    %0 = arith.cmpi eq, %arg1, %c0_i32 : i32
    %1 = arith.extui %0 : i1 to i32
    %c0_i32_0 = arith.constant 0 : i32
    %2 = arith.cmpi ne, %1, %c0_i32_0 : i32
    scf.if %2 {
      %c0_50 = arith.constant 0 : index
      %c0_51 = arith.constant 0 : index
      %180 = vector.load %arg7[%c0_50, %c0_51] : memref<8x128xf32, #tpu.memory_space<vmem>>, vector<8x128xf32>
      %c0_52 = arith.constant 0 : index
      %c0_53 = arith.constant 0 : index
      %181 = vector.load %arg12[%c0_52, %c0_53] : memref<8x128xf32, #tpu.memory_space<vmem>>, vector<8x128xf32>
      tpu.vector_store %arg12[%c0_52, %c0_53], %180 {strides = array<i32>} : memref<8x128xf32, #tpu.memory_space<vmem>>, vector<8x128xf32>,
      %c0_54 = arith.constant 0 : index
      %c0_55 = arith.constant 0 : index
      %182 = vector.load %arg8[%c0_54, %c0_55] : memref<8x128xf32, #tpu.memory_space<vmem>>, vector<8x128xf32>
      %c0_56 = arith.constant 0 : index
      %c0_57 = arith.constant 0 : index
      %183 = vector.load %arg13[%c0_56, %c0_57] : memref<8x128xf32, #tpu.memory_space<vmem>>, vector<8x128xf32>
      tpu.vector_store %arg13[%c0_56, %c0_57], %182 {strides = array<i32>} : memref<8x128xf32, #tpu.memory_space<vmem>>, vector<8x128xf32>,
    } else {
    }
    %c0 = arith.constant 0 : index
    %c0_1 = arith.constant 0 : index
    %c0_2 = arith.constant 0 : index
    %3 = vector.load %arg3[%c0, %c0_1, %c0_2] : memref<4x8x128xbf16, #tpu.memory_space<vmem>>, vector<4x8x128xbf16>
    %4 = vector.shape_cast %3 : vector<4x8x128xbf16> to vector<32x128xbf16>
    %c0_3 = arith.constant 0 : index
    %c0_4 = arith.constant 0 : index
    %5 = vector.load %arg4[%c0_3, %c0_4] : memref<128x512xbf16, #tpu.memory_space<vmem>>, vector<128x512xbf16>
    %cst = arith.constant dense<0.000000e+00> : vector<32x512xf32>
    %6 = tpu.matmul %4, %5, %cst {dimension_numbers = #tpu.dot_dimension_numbers<[1], [0], [0], [1], [0, 0, 1, 1], [], []>} : vector<32x128xbf16>, vector<128x512xbf16>, vector<32x512xf32> -> vector<32x512xf32>
    %c0_5 = arith.constant 0 : index
    %c0_6 = arith.constant 0 : index
    %7 = vector.load %arg5[%c0_5, %c0_6] : memref<1x512xf32, #tpu.memory_space<vmem>>, vector<1x512xf32>
    %8 = vector.broadcast %7 : vector<1x512xf32> to vector<32x512xf32>
    %9 = arith.addf %6, %8 : vector<32x512xf32>
    %10 = vector.shape_cast %9 : vector<32x512xf32> to vector<4x8x512xf32>
    %c0_7 = arith.constant 0 : index
    %c0_8 = arith.constant 0 : index
    %c0_9 = arith.constant 0 : index
    %11 = vector.load %arg11[%c0_7, %c0_8, %c0_9] : memref<4x8x512xf32, #tpu.memory_space<vmem>>, vector<4x8x512xf32>
    tpu.vector_store %arg11[%c0_7, %c0_8, %c0_9], %10 {strides = array<i32>} : memref<4x8x512xf32, #tpu.memory_space<vmem>>, vector<4x8x512xf32>,
    %c0_10 = arith.constant 0 : index
    %c0_11 = arith.constant 0 : index
    %12 = vector.load %arg6[%c0_10, %c0_11] : memref<128x512xbf16, #tpu.memory_space<vmem>>, vector<128x512xbf16>
    %c0_12 = arith.constant 0 : index
    %c0_13 = arith.constant 0 : index
    %13 = vector.load %arg2[%c0_12, %c0_13] : memref<8x1xi32, #tpu.memory_space<vmem>>, vector<8x1xi32>
    %c4_i32 = arith.constant 4 : i32
    %14 = arith.muli %arg1, %c4_i32 : i32
    %15 = vector.broadcast %14 : i32 to vector<8x1xi32>
    %16 = arith.subi %13, %15 : vector<8x1xi32>
    %c0_14 = arith.constant 0 : index
    %c0_15 = arith.constant 0 : index
    %17 = vector.load %arg12[%c0_14, %c0_15] : memref<8x128xf32, #tpu.memory_space<vmem>>, vector<8x128xf32>
    %c0_16 = arith.constant 0 : index
    %c0_17 = arith.constant 0 : index
    %18 = vector.load %arg13[%c0_16, %c0_17] : memref<8x128xf32, #tpu.memory_space<vmem>>, vector<8x128xf32>
    %c0_i32_18 = arith.constant 0 : i32
    %19 = arith.index_cast %c0_i32_18 : i32 to index
    %c0_19 = arith.constant 0 : index
    %c0_20 = arith.constant 0 : index
    %20 = vector.load %arg11[%19, %c0_19, %c0_20] : memref<4x8x512xf32, #tpu.memory_space<vmem>>, vector<1x8x512xf32>
    %21 = vector.shape_cast %20 : vector<1x8x512xf32> to vector<8x512xf32>
    %22 = arith.truncf %17 : vector<8x128xf32> to vector<8x128xbf16>
    %cst_21 = arith.constant dense<0.000000e+00> : vector<8x512xf32>
    %23 = tpu.matmul %22, %12, %cst_21 {dimension_numbers = #tpu.dot_dimension_numbers<[1], [0], [0], [1], [0, 0, 1, 1], [], []>} : vector<8x128xbf16>, vector<128x512xbf16>, vector<8x512xf32> -> vector<8x512xf32>
    %24 = arith.addf %21, %23 : vector<8x512xf32>
    %25 = vector.extract_strided_slice %24 {offsets = [0, 0], sizes = [8, 128], strides = [1, 1]} : vector<8x512xf32> to vector<8x128xf32>
    %26 = arith.negf %25 : vector<8x128xf32>
    %27 = math.exp %26 : vector<8x128xf32>
    %cst_22 = arith.constant 1.000000e+00 : f32
    %28 = vector.broadcast %cst_22 : f32 to vector<8x128xf32>
    %29 = arith.addf %28, %27 : vector<8x128xf32>
    %30 = arith.divf %28, %29 : vector<8x128xf32>
    %31 = vector.extract_strided_slice %24 {offsets = [0, 128], sizes = [8, 128], strides = [1, 1]} : vector<8x512xf32> to vector<8x128xf32>
    %32 = arith.negf %31 : vector<8x128xf32>
    %33 = math.exp %32 : vector<8x128xf32>
    %cst_23 = arith.constant 1.000000e+00 : f32
    %34 = vector.broadcast %cst_23 : f32 to vector<8x128xf32>
    %35 = arith.addf %34, %33 : vector<8x128xf32>
    %36 = arith.divf %34, %35 : vector<8x128xf32>
    %37 = vector.extract_strided_slice %24 {offsets = [0, 256], sizes = [8, 128], strides = [1, 1]} : vector<8x512xf32> to vector<8x128xf32>
    %38 = math.tanh %37 : vector<8x128xf32>
    %39 = vector.extract_strided_slice %24 {offsets = [0, 384], sizes = [8, 128], strides = [1, 1]} : vector<8x512xf32> to vector<8x128xf32>
    %40 = arith.negf %39 : vector<8x128xf32>
    %41 = math.exp %40 : vector<8x128xf32>
    %cst_24 = arith.constant 1.000000e+00 : f32
    %42 = vector.broadcast %cst_24 : f32 to vector<8x128xf32>
    %43 = arith.addf %42, %41 : vector<8x128xf32>
    %44 = arith.divf %42, %43 : vector<8x128xf32>
    %45 = arith.mulf %36, %18 : vector<8x128xf32>
    %46 = arith.mulf %30, %38 : vector<8x128xf32>
    %47 = arith.addf %45, %46 : vector<8x128xf32>
    %48 = math.tanh %47 : vector<8x128xf32>
    %49 = arith.mulf %44, %48 : vector<8x128xf32>
    %50 = vector.broadcast %c0_i32_18 : i32 to vector<8x1xi32>
    %51 = arith.cmpi slt, %50, %16 : vector<8x1xi32>
    %52 = vector.shape_cast %51 : vector<8x1xi1> to vector<8x1xi1>
    %53 = vector.broadcast %52 : vector<8x1xi1> to vector<8x128xi1>
    %54 = arith.select %53, %49, %17 : vector<8x128xi1>, vector<8x128xf32>
    %55 = vector.shape_cast %51 : vector<8x1xi1> to vector<8x1xi1>
    %56 = vector.broadcast %55 : vector<8x1xi1> to vector<8x128xi1>
    %57 = arith.select %56, %47, %18 : vector<8x128xi1>, vector<8x128xf32>
    %c1_i32 = arith.constant 1 : i32
    %58 = arith.index_cast %c1_i32 : i32 to index
    %c0_25 = arith.constant 0 : index
    %c0_26 = arith.constant 0 : index
    %59 = vector.load %arg11[%58, %c0_25, %c0_26] : memref<4x8x512xf32, #tpu.memory_space<vmem>>, vector<1x8x512xf32>
    %60 = vector.shape_cast %59 : vector<1x8x512xf32> to vector<8x512xf32>
    %61 = arith.truncf %54 : vector<8x128xf32> to vector<8x128xbf16>
    %cst_27 = arith.constant dense<0.000000e+00> : vector<8x512xf32>
    %62 = tpu.matmul %61, %12, %cst_27 {dimension_numbers = #tpu.dot_dimension_numbers<[1], [0], [0], [1], [0, 0, 1, 1], [], []>} : vector<8x128xbf16>, vector<128x512xbf16>, vector<8x512xf32> -> vector<8x512xf32>
    %63 = arith.addf %60, %62 : vector<8x512xf32>
    %64 = vector.extract_strided_slice %63 {offsets = [0, 0], sizes = [8, 128], strides = [1, 1]} : vector<8x512xf32> to vector<8x128xf32>
    %65 = arith.negf %64 : vector<8x128xf32>
    %66 = math.exp %65 : vector<8x128xf32>
    %cst_28 = arith.constant 1.000000e+00 : f32
    %67 = vector.broadcast %cst_28 : f32 to vector<8x128xf32>
    %68 = arith.addf %67, %66 : vector<8x128xf32>
    %69 = arith.divf %67, %68 : vector<8x128xf32>
    %70 = vector.extract_strided_slice %63 {offsets = [0, 128], sizes = [8, 128], strides = [1, 1]} : vector<8x512xf32> to vector<8x128xf32>
    %71 = arith.negf %70 : vector<8x128xf32>
    %72 = math.exp %71 : vector<8x128xf32>
    %cst_29 = arith.constant 1.000000e+00 : f32
    %73 = vector.broadcast %cst_29 : f32 to vector<8x128xf32>
    %74 = arith.addf %73, %72 : vector<8x128xf32>
    %75 = arith.divf %73, %74 : vector<8x128xf32>
    %76 = vector.extract_strided_slice %63 {offsets = [0, 256], sizes = [8, 128], strides = [1, 1]} : vector<8x512xf32> to vector<8x128xf32>
    %77 = math.tanh %76 : vector<8x128xf32>
    %78 = vector.extract_strided_slice %63 {offsets = [0, 384], sizes = [8, 128], strides = [1, 1]} : vector<8x512xf32> to vector<8x128xf32>
    %79 = arith.negf %78 : vector<8x128xf32>
    %80 = math.exp %79 : vector<8x128xf32>
    %cst_30 = arith.constant 1.000000e+00 : f32
    %81 = vector.broadcast %cst_30 : f32 to vector<8x128xf32>
    %82 = arith.addf %81, %80 : vector<8x128xf32>
    %83 = arith.divf %81, %82 : vector<8x128xf32>
    %84 = arith.mulf %75, %57 : vector<8x128xf32>
    %85 = arith.mulf %69, %77 : vector<8x128xf32>
    %86 = arith.addf %84, %85 : vector<8x128xf32>
    %87 = math.tanh %86 : vector<8x128xf32>
    %88 = arith.mulf %83, %87 : vector<8x128xf32>
    %89 = vector.broadcast %c1_i32 : i32 to vector<8x1xi32>
    %90 = arith.cmpi slt, %89, %16 : vector<8x1xi32>
    %91 = vector.shape_cast %90 : vector<8x1xi1> to vector<8x1xi1>
    %92 = vector.broadcast %91 : vector<8x1xi1> to vector<8x128xi1>
    %93 = arith.select %92, %88, %54 : vector<8x128xi1>, vector<8x128xf32>
    %94 = vector.shape_cast %90 : vector<8x1xi1> to vector<8x1xi1>
    %95 = vector.broadcast %94 : vector<8x1xi1> to vector<8x128xi1>
    %96 = arith.select %95, %86, %57 : vector<8x128xi1>, vector<8x128xf32>
    %c2_i32 = arith.constant 2 : i32
    %97 = arith.index_cast %c2_i32 : i32 to index
    %c0_31 = arith.constant 0 : index
    %c0_32 = arith.constant 0 : index
    %98 = vector.load %arg11[%97, %c0_31, %c0_32] : memref<4x8x512xf32, #tpu.memory_space<vmem>>, vector<1x8x512xf32>
    %99 = vector.shape_cast %98 : vector<1x8x512xf32> to vector<8x512xf32>
    %100 = arith.truncf %93 : vector<8x128xf32> to vector<8x128xbf16>
    %cst_33 = arith.constant dense<0.000000e+00> : vector<8x512xf32>
    %101 = tpu.matmul %100, %12, %cst_33 {dimension_numbers = #tpu.dot_dimension_numbers<[1], [0], [0], [1], [0, 0, 1, 1], [], []>} : vector<8x128xbf16>, vector<128x512xbf16>, vector<8x512xf32> -> vector<8x512xf32>
    %102 = arith.addf %99, %101 : vector<8x512xf32>
    %103 = vector.extract_strided_slice %102 {offsets = [0, 0], sizes = [8, 128], strides = [1, 1]} : vector<8x512xf32> to vector<8x128xf32>
    %104 = arith.negf %103 : vector<8x128xf32>
    %105 = math.exp %104 : vector<8x128xf32>
    %cst_34 = arith.constant 1.000000e+00 : f32
    %106 = vector.broadcast %cst_34 : f32 to vector<8x128xf32>
    %107 = arith.addf %106, %105 : vector<8x128xf32>
    %108 = arith.divf %106, %107 : vector<8x128xf32>
    %109 = vector.extract_strided_slice %102 {offsets = [0, 128], sizes = [8, 128], strides = [1, 1]} : vector<8x512xf32> to vector<8x128xf32>
    %110 = arith.negf %109 : vector<8x128xf32>
    %111 = math.exp %110 : vector<8x128xf32>
    %cst_35 = arith.constant 1.000000e+00 : f32
    %112 = vector.broadcast %cst_35 : f32 to vector<8x128xf32>
    %113 = arith.addf %112, %111 : vector<8x128xf32>
    %114 = arith.divf %112, %113 : vector<8x128xf32>
    %115 = vector.extract_strided_slice %102 {offsets = [0, 256], sizes = [8, 128], strides = [1, 1]} : vector<8x512xf32> to vector<8x128xf32>
    %116 = math.tanh %115 : vector<8x128xf32>
    %117 = vector.extract_strided_slice %102 {offsets = [0, 384], sizes = [8, 128], strides = [1, 1]} : vector<8x512xf32> to vector<8x128xf32>
    %118 = arith.negf %117 : vector<8x128xf32>
    %119 = math.exp %118 : vector<8x128xf32>
    %cst_36 = arith.constant 1.000000e+00 : f32
    %120 = vector.broadcast %cst_36 : f32 to vector<8x128xf32>
    %121 = arith.addf %120, %119 : vector<8x128xf32>
    %122 = arith.divf %120, %121 : vector<8x128xf32>
    %123 = arith.mulf %114, %96 : vector<8x128xf32>
    %124 = arith.mulf %108, %116 : vector<8x128xf32>
    %125 = arith.addf %123, %124 : vector<8x128xf32>
    %126 = math.tanh %125 : vector<8x128xf32>
    %127 = arith.mulf %122, %126 : vector<8x128xf32>
    %128 = vector.broadcast %c2_i32 : i32 to vector<8x1xi32>
    %129 = arith.cmpi slt, %128, %16 : vector<8x1xi32>
    %130 = vector.shape_cast %129 : vector<8x1xi1> to vector<8x1xi1>
    %131 = vector.broadcast %130 : vector<8x1xi1> to vector<8x128xi1>
    %132 = arith.select %131, %127, %93 : vector<8x128xi1>, vector<8x128xf32>
    %133 = vector.shape_cast %129 : vector<8x1xi1> to vector<8x1xi1>
    %134 = vector.broadcast %133 : vector<8x1xi1> to vector<8x128xi1>
    %135 = arith.select %134, %125, %96 : vector<8x128xi1>, vector<8x128xf32>
    %c3_i32 = arith.constant 3 : i32
    %136 = arith.index_cast %c3_i32 : i32 to index
    %c0_37 = arith.constant 0 : index
    %c0_38 = arith.constant 0 : index
    %137 = vector.load %arg11[%136, %c0_37, %c0_38] : memref<4x8x512xf32, #tpu.memory_space<vmem>>, vector<1x8x512xf32>
    %138 = vector.shape_cast %137 : vector<1x8x512xf32> to vector<8x512xf32>
    %139 = arith.truncf %132 : vector<8x128xf32> to vector<8x128xbf16>
    %cst_39 = arith.constant dense<0.000000e+00> : vector<8x512xf32>
    %140 = tpu.matmul %139, %12, %cst_39 {dimension_numbers = #tpu.dot_dimension_numbers<[1], [0], [0], [1], [0, 0, 1, 1], [], []>} : vector<8x128xbf16>, vector<128x512xbf16>, vector<8x512xf32> -> vector<8x512xf32>
    %141 = arith.addf %138, %140 : vector<8x512xf32>
    %142 = vector.extract_strided_slice %141 {offsets = [0, 0], sizes = [8, 128], strides = [1, 1]} : vector<8x512xf32> to vector<8x128xf32>
    %143 = arith.negf %142 : vector<8x128xf32>
    %144 = math.exp %143 : vector<8x128xf32>
    %cst_40 = arith.constant 1.000000e+00 : f32
    %145 = vector.broadcast %cst_40 : f32 to vector<8x128xf32>
    %146 = arith.addf %145, %144 : vector<8x128xf32>
    %147 = arith.divf %145, %146 : vector<8x128xf32>
    %148 = vector.extract_strided_slice %141 {offsets = [0, 128], sizes = [8, 128], strides = [1, 1]} : vector<8x512xf32> to vector<8x128xf32>
    %149 = arith.negf %148 : vector<8x128xf32>
    %150 = math.exp %149 : vector<8x128xf32>
    %cst_41 = arith.constant 1.000000e+00 : f32
    %151 = vector.broadcast %cst_41 : f32 to vector<8x128xf32>
    %152 = arith.addf %151, %150 : vector<8x128xf32>
    %153 = arith.divf %151, %152 : vector<8x128xf32>
    %154 = vector.extract_strided_slice %141 {offsets = [0, 256], sizes = [8, 128], strides = [1, 1]} : vector<8x512xf32> to vector<8x128xf32>
    %155 = math.tanh %154 : vector<8x128xf32>
    %156 = vector.extract_strided_slice %141 {offsets = [0, 384], sizes = [8, 128], strides = [1, 1]} : vector<8x512xf32> to vector<8x128xf32>
    %157 = arith.negf %156 : vector<8x128xf32>
    %158 = math.exp %157 : vector<8x128xf32>
    %cst_42 = arith.constant 1.000000e+00 : f32
    %159 = vector.broadcast %cst_42 : f32 to vector<8x128xf32>
    %160 = arith.addf %159, %158 : vector<8x128xf32>
    %161 = arith.divf %159, %160 : vector<8x128xf32>
    %162 = arith.mulf %153, %135 : vector<8x128xf32>
    %163 = arith.mulf %147, %155 : vector<8x128xf32>
    %164 = arith.addf %162, %163 : vector<8x128xf32>
    %165 = math.tanh %164 : vector<8x128xf32>
    %166 = arith.mulf %161, %165 : vector<8x128xf32>
    %167 = vector.broadcast %c3_i32 : i32 to vector<8x1xi32>
    %168 = arith.cmpi slt, %167, %16 : vector<8x1xi32>
    %169 = vector.shape_cast %168 : vector<8x1xi1> to vector<8x1xi1>
    %170 = vector.broadcast %169 : vector<8x1xi1> to vector<8x128xi1>
    %171 = arith.select %170, %166, %132 : vector<8x128xi1>, vector<8x128xf32>
    %172 = vector.shape_cast %168 : vector<8x1xi1> to vector<8x1xi1>
    %173 = vector.broadcast %172 : vector<8x1xi1> to vector<8x128xi1>
    %174 = arith.select %173, %164, %135 : vector<8x128xi1>, vector<8x128xf32>
    %c4_i32_43 = arith.constant 4 : i32
    %c0_44 = arith.constant 0 : index
    %c0_45 = arith.constant 0 : index
    %175 = vector.load %arg12[%c0_44, %c0_45] : memref<8x128xf32, #tpu.memory_space<vmem>>, vector<8x128xf32>
    tpu.vector_store %arg12[%c0_44, %c0_45], %171 {strides = array<i32>} : memref<8x128xf32, #tpu.memory_space<vmem>>, vector<8x128xf32>,
    %c0_46 = arith.constant 0 : index
    %c0_47 = arith.constant 0 : index
    %176 = vector.load %arg13[%c0_46, %c0_47] : memref<8x128xf32, #tpu.memory_space<vmem>>, vector<8x128xf32>
    tpu.vector_store %arg13[%c0_46, %c0_47], %174 {strides = array<i32>} : memref<8x128xf32, #tpu.memory_space<vmem>>, vector<8x128xf32>,
    %c1_i32_48 = arith.constant 1 : i32
    %177 = arith.cmpi eq, %arg1, %c1_i32_48 : i32
    %178 = arith.extui %177 : i1 to i32
    %c0_i32_49 = arith.constant 0 : i32
    %179 = arith.cmpi ne, %178, %c0_i32_49 : i32
    scf.if %179 {
      %c0_50 = arith.constant 0 : index
      %c0_51 = arith.constant 0 : index
      %180 = vector.load %arg12[%c0_50, %c0_51] : memref<8x128xf32, #tpu.memory_space<vmem>>, vector<8x128xf32>
      %c0_52 = arith.constant 0 : index
      %c0_53 = arith.constant 0 : index
      %181 = vector.load %arg9[%c0_52, %c0_53] : memref<8x128xf32, #tpu.memory_space<vmem>>, vector<8x128xf32>
      tpu.vector_store %arg9[%c0_52, %c0_53], %180 {strides = array<i32>} : memref<8x128xf32, #tpu.memory_space<vmem>>, vector<8x128xf32>,
      %c0_54 = arith.constant 0 : index
      %c0_55 = arith.constant 0 : index
      %182 = vector.load %arg13[%c0_54, %c0_55] : memref<8x128xf32, #tpu.memory_space<vmem>>, vector<8x128xf32>
      %c0_56 = arith.constant 0 : index
      %c0_57 = arith.constant 0 : index
      %183 = vector.load %arg10[%c0_56, %c0_57] : memref<8x128xf32, #tpu.memory_space<vmem>>, vector<8x128xf32>
      tpu.vector_store %arg10[%c0_56, %c0_57], %182 {strides = array<i32>} : memref<8x128xf32, #tpu.memory_space<vmem>>, vector<8x128xf32>,
    } else {
    }
    return
  }
  func.func @transform_0(%arg0: i32, %arg1: i32) -> (i32, i32) {
    %c0_i32 = arith.constant 0 : i32
    %c0_i32_0 = arith.constant 0 : i32
    return %arg0, %c0_i32 : i32, i32
  }
  func.func @transform_1(%arg0: i32, %arg1: i32) -> (i32, i32, i32) {
    %c0_i32 = arith.constant 0 : i32
    %c0_i32_0 = arith.constant 0 : i32
    return %arg1, %arg0, %c0_i32 : i32, i32, i32
  }
  func.func @transform_2(%arg0: i32, %arg1: i32) -> (i32, i32) {
    %c0_i32 = arith.constant 0 : i32
    %c0_i32_0 = arith.constant 0 : i32
    %c0_i32_1 = arith.constant 0 : i32
    return %c0_i32, %c0_i32_0 : i32, i32
  }
  func.func @transform_3(%arg0: i32, %arg1: i32) -> (i32, i32) {
    %c0_i32 = arith.constant 0 : i32
    %c0_i32_0 = arith.constant 0 : i32
    %c0_i32_1 = arith.constant 0 : i32
    return %c0_i32, %c0_i32_0 : i32, i32
  }
  func.func @transform_4(%arg0: i32, %arg1: i32) -> (i32, i32) {
    %c0_i32 = arith.constant 0 : i32
    %c0_i32_0 = arith.constant 0 : i32
    %c0_i32_1 = arith.constant 0 : i32
    return %c0_i32, %c0_i32_0 : i32, i32
  }
  func.func @transform_5(%arg0: i32, %arg1: i32) -> (i32, i32) {
    %c0_i32 = arith.constant 0 : i32
    %c0_i32_0 = arith.constant 0 : i32
    return %arg0, %c0_i32 : i32, i32
  }
  func.func @transform_6(%arg0: i32, %arg1: i32) -> (i32, i32) {
    %c0_i32 = arith.constant 0 : i32
    %c0_i32_0 = arith.constant 0 : i32
    return %arg0, %c0_i32 : i32, i32
  }
  func.func @transform_7(%arg0: i32, %arg1: i32) -> (i32, i32) {
    %c0_i32 = arith.constant 0 : i32
    %c0_i32_0 = arith.constant 0 : i32
    return %arg0, %c0_i32 : i32, i32
  }
  func.func @transform_8(%arg0: i32, %arg1: i32) -> (i32, i32) {
    %c0_i32 = arith.constant 0 : i32
    %c0_i32_0 = arith.constant 0 : i32
    return %arg0, %c0_i32 : i32, i32
  }
}

</mosaic_0001>

<bundles_post_ra>
// kernel: tpu_custom_call.1
= control target key start
LH: loop header
LB: loop body
LE: loop exit
PB: predicated region body
PF: predicated region fallthrough
CT: control target
= control target key end

     0   :  { %14 = vsyncpa [#allocation6], 0  ;;  %s2783_s0 = inlined_call_operand.vmem [shape: s32[8,1], index: 0, kind: input, shape index: {}]   ;;  %s2784_s1 = inlined_call_operand.hbm [shape: bf16[8,8,128], index: 1, kind: input, shape index: {}]   ;;  %s2785_s2 = inlined_call_operand.hbm [shape: bf16[128,512], index: 2, kind: input, shape index: {}]   ;;  %s2786_s3 = inlined_call_operand.hbm [shape: f32[1,512], index: 3, kind: input, shape index: {}]   ;;  %s2787_s4 = inlined_call_operand.hbm [shape: bf16[128,512], index: 4, kind: input, shape index: {}]   ;;  %s2788_s5 = inlined_call_operand.vmem [shape: f32[8,128], index: 5, kind: input, shape index: {}]   ;;  %s2789_s6 = inlined_call_operand.vmem [shape: f32[8,128], index: 6, kind: input, shape index: {}]   ;;  %s2790_s7 = inlined_call_operand.hbm [shape: f32[8,128], index: 7, kind: output, shape index: {0}]   ;;  %s2791_s8 = inlined_call_operand.hbm [shape: f32[8,128], index: 8, kind: output, shape index: {1}]  }
   0x1   :  { %16 = vsyncpa [#allocation6 + $0x1], 0 }
   0x2   :  { %17 = vsyncpa [#allocation9], 0 }
   0x3   :  { %18 = vsyncpa [#allocation12], 0 }
   0x4   :  { %19 = vsyncpa [#allocation7], 0 }
   0x5   :  { %20 = vsyncpa [#allocation15], 0  ;;  %s2318_s27 = smov 0   ;;  %s2320_s28 = smov 0  }
   0x6   :  { %s2322_s29 = smov 0   ;;  %s2324_s30 = smov 0  }
   0x7   :  { %s2326_s9 = smov 0   ;;  %s2328_s10 = smov 0  }
   0x8 LB: > { %s2795_s11 = sadd.s32 4294967295, %s2260_s10   ;;  %p86_p0 = scmp.ne.s32.totalorder %s2244_s28, %s2240_s27  ;;  %s2260_s10 = sphi %s2328_s10, %s26_s10   ;;  %s2256_s9 = sphi %s2326_s9, %s2830_s9   ;;  %s2252_s30 = sphi %s2324_s30, %s2829_s30   ;;  %s2248_s29 = sphi %s2322_s29, %s2828_s29   ;;  %s2244_s28 = sphi %s2320_s28, %s2827_s28   ;;  %s2240_s27 = sphi %s2318_s27, %s2826_s27  }
   0x9   : > { %p2350_p1 = scmp.eq.s32.totalorder %s2795_s11, 0  ;;  %p1667_p2 = scmp.ge.s32.totalorder %s2260_s10, 1 }
   0xa   : > { %p264_p3 = scmp.lt.s32.totalorder %s2260_s10, 3  ;;  %s2262_s15 = smov [#allocation8]  }
   0xb   : > { %s2798_s12 = scalar_select %p2350_p1, 1, 0 }
   0xc   : > { %p2358_p4 = por %p2350_p1, %p86_p0  ;;  %p2362_p5 = pnand %p1667_p2, %p264_p3 }
   0xd   : > { %s283_s16 = sshll.u32 %s2262_s15, 4  ;;  %s2263_s18 = smov [#allocation10]   ;;  %s284_s16 = int_to_ptr.vmem [resolvable:$true] %s283_s16 }
   0xe   : > { %s2799_s13 = scalar_select %p2358_p4, 1, 0 }
   0xf   : > { %p1793_p6 = pneg %p2362_p5  ;;  %s297_s19 = sshll.u32 %s2263_s18, 4  ;;  %s298_s19 = int_to_ptr.vmem [resolvable:$true] %s297_s19 }
  0x10   : > { %s2264_s20 = smov [#allocation11]   ;;  %s2051_s22 = scalar_lea.vmem %s284_s16, 4096 }
  0x11   : > { %p2370_p7 = pnand %p1793_p6, %p2350_p1  ;;  %s307_s21 = sshll.u32 %s2264_s20, 4  ;;  %s308_s21 = int_to_ptr.vmem [resolvable:$true] %s307_s21 }
  0x12   : > { %p2052_p9 = scmp.ne.s32.totalorder %s284_s16, %s2051_s22  ;;  %p2059_p12 = scmp.lt.s32.totalorder %s284_s16, %s284_s16 }
  0x13   : > { %p2042_p8 = pneg %p2370_p7  ;;  %p2060_p13 = scmp.lt.s32.totalorder %s2051_s22, %s2051_s22 }
  0x15   : > { %p2054_p10 = pnand %p2052_p9, %p2042_p8  ;;  %p2061_p0 = por %p2060_p13, %p2059_p12 }
  0x17   : > { %p2055_p11 = pneg %p2054_p10 }
  0x19   : > { %p2062_p2 = pnand %p2061_p0, %p2055_p11 }
  0x1b   : > { %2065 = shalt.err (!%p2062_p2)
}
  0x1c   : > { %s2265_s23 = smov 256   ;;  %s2266_s24 = smov 16  }
  0x1d   : > { %1796 = dma.hbm_to_vmem [thread:$0]  (!%p2370_p7), %s2785_s2, 4096, %s284_s16, [#allocation9], %s2265_s23, %s2265_s23, %s2266_s24  }
  0x1e   : > { %s2077_s27 = scalar_lea.vmem %s298_s19, 64  ;;  %p2085_p10 = scmp.lt.s32.totalorder %s298_s19, %s298_s19 }
  0x1f   : > { %p2078_p3 = scmp.ne.s32.totalorder %s298_s19, %s2077_s27  ;;  %p2086_p1 = scmp.lt.s32.totalorder %s2077_s27, %s2077_s27 }
  0x21   : > { %p2080_p6 = pnand %p2078_p3, %p2042_p8  ;;  %p2087_p12 = por %p2086_p1, %p2085_p10 }
  0x23   : > { %p2081_p9 = pneg %p2080_p6 }
  0x25   : > { %p2088_p11 = pnand %p2087_p12, %p2081_p9 }
  0x27   : > { %2091 = shalt.err (!%p2088_p11)
}
  0x28   : > { %1799 = dma.hbm_to_vmem [thread:$0]  (!%p2370_p7), %s2786_s3, 64, %s298_s19, [#allocation9]  }
  0x29   : > { %s2103_s16 = scalar_lea.vmem %s308_s21, 4096  ;;  %p2111_p3 = scmp.lt.s32.totalorder %s308_s21, %s308_s21 }
  0x2a   : > { %p2104_p13 = scmp.ne.s32.totalorder %s308_s21, %s2103_s16  ;;  %p2112_p6 = scmp.lt.s32.totalorder %s2103_s16, %s2103_s16 }
  0x2c   : > { %p2106_p0 = pnand %p2104_p13, %p2042_p8  ;;  %p2113_p4 = por %p2112_p6, %p2111_p3 }
  0x2e   : > { %p2107_p2 = pneg %p2106_p0 }
  0x30   : > { %p2114_p1 = pnand %p2113_p4, %p2107_p2 }
  0x32   : > { %2117 = shalt.err (!%p2114_p1)
}
  0x33   : > { %1802 = dma.hbm_to_vmem [thread:$0]  (!%p2370_p7), %s2787_s4, 4096, %s308_s21, [#allocation12], %s2265_s23, %s2265_s23, %s2266_s24  }
  0x34   : > { %s73_s19 = sadd.s32 1, %s2248_s29  ;;  %s35_s25 = sadd.s32 1, %s2256_s9 }
  0x35   : > { %p80_p4 = scmp.ne.s32.totalorder %s2248_s29, %s2244_s28  ;;  %p36_p8 = scmp.ge.s32.totalorder %s35_s25, 2 }
  0x36   : > { %p81_p9 = scmp.eq.s32.totalorder %s2260_s10, 0  ;;  %p1810_p10 = scmp.lt.s32.totalorder %s2260_s10, 2 }
  0x37   : > { %s335_s17 = sand.u32 1, %s2248_s29   ;;  %s2832_s25 = smov (%p36_p8, %s35_s25), 0 }
  0x38   : > { %p82_p12 = por %p81_p9, %p80_p4  ;;  %s68_s26 = ssub.s32 %s2256_s9, %s2832_s25 }
  0x39   : > { %s1675_s27 = sshll.u32 %s335_s17, 4  ;;  %p71_p11 = scmp.eq.s32.totalorder %s68_s26, 0 }
  0x3a   : > { %s1770_s15 = sshll.u32 %s2256_s9, 8  ;;  %s339_s18 = scalar_lea.vmem [#allocation5], %s1675_s27 }
  0x3b   : > { %s347_s16 = sshll.u32 %s339_s18, 4  ;;  %s346_s20 = scalar_lea.hbm %s2784_s1, %s1770_s15  ;;  %s348_s16 = int_to_ptr.vmem [resolvable:$true] %s347_s16 }
  0x3c   : > { %s2413_s21 = scalar_select %p71_p11, %s2248_s29, %s73_s19  }
  0x3d   : > { %p2420_p7 = pnand %p1810_p10, %p82_p12  ;;  %s336_s11 = scalar_lea.sflag [#allocation6], %s335_s17 }
  0x3e   : > { %s2131_s26 = scalar_lea.vmem %s348_s16, 256  ;;  %s2267_s19 = smov [#allocation5]  }
  0x3f   : > { %p2120_p13 = pneg %p2420_p7  ;;  %p2132_p0 = scmp.ne.s32.totalorder %s348_s16, %s2131_s26 }
  0x40   : > { %s2136_s27 = sshll.u32 %s2267_s19, 4  ;;  %s2137_s27 = int_to_ptr.vmem [resolvable:$false] %s2136_s27 }
  0x41   : > { %p2134_p2 = pnand %p2132_p0, %p2120_p13  ;;  %s2138_s18 = scalar_lea.vmem %s2137_s27, 512 }
  0x42   : > { %p2139_p6 = scmp.lt.s32.totalorder %s348_s16, %s2137_s27  ;;  %p2140_p1 = scmp.lt.s32.totalorder %s2138_s18, %s2131_s26 }
  0x43   : > { %p2135_p3 = pneg %p2134_p2 }
  0x44   : > { %p2141_p4 = por %p2140_p1, %p2139_p6 }
  0x46   : > { %p2142_p8 = pnand %p2141_p4, %p2135_p3 }
  0x48   : > { %2145 = shalt.err (!%p2142_p8)
}
  0x49   : > { %s2268_s15 = smov 64   ;;  %s2269_s23 = smov 4  }
  0x4a   : > { %1806 = dma.hbm_to_vmem [thread:$0]  (!%p2420_p7), %s346_s20, 256, %s348_s16, %s336_s11, %s2268_s15, %s2268_s15, %s2269_s23  }
  0x4b   : > { %359 = sbr.rel (%p2362_p5) target bundleno = 1209 (0x4b9), region = 48 }
  0x50   : > { %s361_s17 = sand.u32 1, %s2244_s28   ;;  %p2803_p9 = scmp.ne.s32.totalorder %s2799_s13, 0 }
  0x51   : > { %s2431_s24 = sshll.u32 %s361_s17, 4  ;;  %s362_s19 = scalar_lea.sflag [#allocation6], %s361_s17 }
  0x52   : > { %s365_s27 = scalar_lea.vmem [#allocation5], %s2431_s24 }
  0x53   : > { %2219 = dma.done.wait (%p2803_p9), %s362_s19, 256  }
  0x54   : > { %2221 = vsyncadd (%p2803_p9), %s362_s19, 4294967040  ;;  %p2804_p10 = scmp.ne.s32.totalorder %s2798_s12, 0 }
  0x56   : > { %2223 = dma.done.wait (%p2804_p10), [#allocation9], 4160  }
  0x57   : > { %2225 = vsyncadd (%p2804_p10), [#allocation9], 4294963136 }
  0x58   : > { %2227 = dma.done.wait (%p2804_p10), [#allocation12], 4096  }
  0x59   : > { %2229 = vsyncadd (%p2804_p10), [#allocation12], 4294963200  ;;  %p1683_p5 = scmp.ne.s32.totalorder %s2252_s30, 0 }
  0x5b   : > { %434 = sbr.rel (%p1683_p5) target bundleno = 99 (0x63), region = 68 }
  0x60   : > { %v435_v0 = vld [vmem:[%s2788_s5] sm:$0xff] }
  0x61   : > { %v437_v1 = vld [vmem:[%s2789_s6] sm:$0xff]  ;;  %436 = vst [vmem:[#allocation3] sm:$0xff] %v435_v0 }
  0x62   : > { %438 = vst [vmem:[#allocation4] sm:$0xff] %v437_v1 }
  0x63 PF: > { %v1878_v2 = vld [vmem:[#allocation8 + $0xe4] ss:$16 sps:$4 sm:$0xff]   ;;  %v1880_v3 = vld [vmem:[#allocation8 + $0xec] ss:$16 sps:$4 sm:$0xff]   ;;  %v2796_v4 = vmov 0   ;;  %s1718_s12 = sshll.u32 %s2252_s30, 2 }
  0x64   : > { %701 = vmatprep.mubr.bf16.mxu0 %v2796_v4  ;;  %754 = vmatprep.mubr.bf16.mxu1 %v2796_v4  ;;  %v1882_v5 = vld [vmem:[#allocation8 + $0xe0] ss:$16 sps:$4 sm:$0xff]   ;;  %v1883_v6 = vld [vmem:[#allocation8 + $0xe8] ss:$16 sps:$4 sm:$0xff]   ;;  %v1884_v7 = vld [vmem:[#allocation8 + $0xc4] ss:$16 sps:$4 sm:$0xff]   ;;  %v825_v51 = vstv %s1718_s12 }
  0x65   : > { %669 = vmatprep.subr.bf16.mxu0 %v1878_v2  ;;  %1876 = vset.pattern.permute.xlu0 %v2796_v4  ;;  %v1886_v8 = vld [vmem:[#allocation8 + $0xcc] ss:$16 sps:$4 sm:$0xff]   ;;  %v1888_v9 = vld [vmem:[#allocation8 + $0xc0] ss:$16 sps:$4 sm:$0xff]   ;;  %v1889_v10 = vld [vmem:[#allocation8 + $0xc8] ss:$16 sps:$4 sm:$0xff]  }
  0x66   : > { %722 = vmatprep.subr.bf16.mxu1 %v1880_v3  ;;  %1877 = vset.pattern.permute.xlu1 %v2796_v4  ;;  %v1890_v11 = vld [vmem:[#allocation8 + $0xa4] ss:$16 sps:$4 sm:$0xff]   ;;  %v1892_v12 = vld [vmem:[#allocation8 + $0xac] ss:$16 sps:$4 sm:$0xff]   ;;  %v1894_v13 = vld [vmem:[#allocation8 + $0xa0] ss:$16 sps:$4 sm:$0xff]  }
  0x67   : > { %670 = vmatpush1.bf16.msra.mxu0 %v1882_v5  ;;  %723 = vmatpush1.bf16.msra.mxu1 %v1883_v6  ;;  %v1895_v14 = vld [vmem:[#allocation8 + $0xa8] ss:$16 sps:$4 sm:$0xff]   ;;  %v1896_v15 = vld [vmem:[#allocation8 + $0x84] ss:$16 sps:$4 sm:$0xff]   ;;  %v1898_v16 = vld [vmem:[#allocation8 + $0x8c] ss:$16 sps:$4 sm:$0xff]  }
  0x68   : > { %671 = vmatprep.subr.bf16.mxu0 %v1884_v7  ;;  %724 = vmatprep.subr.bf16.mxu1 %v1886_v8  ;;  %v1900_v17 = vld [vmem:[#allocation8 + $0x80] ss:$16 sps:$4 sm:$0xff]   ;;  %v1901_v18 = vld [vmem:[#allocation8 + $0x88] ss:$16 sps:$4 sm:$0xff]   ;;  %v1902_v19 = vld [vmem:[#allocation8 + $0x64] ss:$16 sps:$4 sm:$0xff]  }
  0x69   : > { %v1904_v20 = vld [vmem:[#allocation8 + $0x6c] ss:$16 sps:$4 sm:$0xff]   ;;  %v1906_v21 = vld [vmem:[#allocation8 + $0x60] ss:$16 sps:$4 sm:$0xff]   ;;  %v1907_v22 = vld [vmem:[#allocation8 + $0x68] ss:$16 sps:$4 sm:$0xff]  }
  0x6a   : > { %v1908_v23 = vld [vmem:[#allocation8 + $0x44] ss:$16 sps:$4 sm:$0xff]   ;;  %v1910_v24 = vld [vmem:[#allocation8 + $0x4c] ss:$16 sps:$4 sm:$0xff]   ;;  %v1912_v25 = vld [vmem:[#allocation8 + $0x40] ss:$16 sps:$4 sm:$0xff]  }
  0x6b   : > { %672 = vmatpush1.bf16.msra.mxu0 %v1888_v9  ;;  %725 = vmatpush1.bf16.msra.mxu1 %v1889_v10  ;;  %v1913_v26 = vld [vmem:[#allocation8 + $0x48] ss:$16 sps:$4 sm:$0xff]   ;;  %v1914_v27 = vld [vmem:[#allocation8 + $0x24] ss:$16 sps:$4 sm:$0xff]   ;;  %v1916_v28 = vld [vmem:[#allocation8 + $0x2c] ss:$16 sps:$4 sm:$0xff]  }
  0x6c   : > { %673 = vmatprep.subr.bf16.mxu0 %v1890_v11  ;;  %726 = vmatprep.subr.bf16.mxu1 %v1892_v12  ;;  %v1918_v29 = vld [vmem:[#allocation8 + $0x20] ss:$16 sps:$4 sm:$0xff]   ;;  %v1919_v30 = vld [vmem:[#allocation8 + $0x28] ss:$16 sps:$4 sm:$0xff]   ;;  %v1920_v31 = vld [vmem:[#allocation8 + $0x4] ss:$16 sps:$4 sm:$0xff]  }
  0x6d   : > { %v1922_v32 = vld [vmem:[#allocation8 + $0xc] ss:$16 sps:$4 sm:$0xff]   ;;  %v1924_v33 = vld [vmem:[#allocation8] ss:$16 sps:$4 sm:$0xff]   ;;  %v1925_v34 = vld [vmem:[#allocation8 + $0x8] ss:$16 sps:$4 sm:$0xff]  }
  0x6e   : > { %v2457_v35 = vld [vmem:[#allocation11 + $0xe4] ss:$16 sps:$4 sm:$0xff]   ;;  %v2459_v36 = vld [vmem:[#allocation11 + $0xec] ss:$16 sps:$4 sm:$0xff]   ;;  %v2463_v38 = vld [vmem:[#allocation11 + $0xe0] ss:$16 sps:$4 sm:$0xff]  }
  0x6f   : > { %674 = vmatpush1.bf16.msra.mxu0 %v1894_v13  ;;  %727 = vmatpush1.bf16.msra.mxu1 %v1895_v14  ;;  %v1926_v37 = vld [vmem:[%s365_s27] sm:$0xff]   ;;  %v2465_v39 = vld [vmem:[#allocation11 + $0xe8] ss:$16 sps:$4 sm:$0xff]   ;;  %v2467_v40 = vld [vmem:[#allocation11 + $0xc4] ss:$16 sps:$4 sm:$0xff]   ;;  %v477_v13 = vlaneseq  ;;  %p1763_p12 = scmp.ne.s32.totalorder %s2252_s30, 1 }
  0x70   : > { %675 = vmatprep.subr.bf16.mxu0 %v1896_v15  ;;  %728 = vmatprep.subr.bf16.mxu1 %v1898_v16  ;;  %v2471_v41 = vld [vmem:[#allocation11 + $0xcc] ss:$16 sps:$4 sm:$0xff]   ;;  %v2473_v42 = vld [vmem:[#allocation11 + $0xc0] ss:$16 sps:$4 sm:$0xff]   ;;  %v2475_v43 = vld [vmem:[#allocation11 + $0xc8] ss:$16 sps:$4 sm:$0xff]  }
  0x71   : > { %v2479_v44 = vld [vmem:[#allocation11 + $0xa4] ss:$16 sps:$4 sm:$0xff]   ;;  %v2483_v45 = vld [vmem:[#allocation11 + $0xac] ss:$16 sps:$4 sm:$0xff]   ;;  %v2485_v46 = vld [vmem:[#allocation11 + $0xa0] ss:$16 sps:$4 sm:$0xff]  }
  0x72   : > { %v1957_v47 = vld [vmem:[%s365_s27 + $0x8] sm:$0xff]   ;;  %v2500_v50 = vld [vmem:[#allocation11 + $0x8c] ss:$16 sps:$4 sm:$0xff]   ;;  %v2504_v52 = vld [vmem:[#allocation11 + $0x80] ss:$16 sps:$4 sm:$0xff]   ;;  %v478_v14 = vshrl.u32 %v477_v13, 7 }
  0x73   : > { %676 = vmatpush1.bf16.msra.mxu0 %v1900_v17  ;;  %729 = vmatpush1.bf16.msra.mxu1 %v1901_v18  ;;  %v2493_v48 = vld [vmem:[#allocation11 + $0xa8] ss:$16 sps:$4 sm:$0xff]   ;;  %v2498_v49 = vld [vmem:[#allocation11 + $0x84] ss:$16 sps:$4 sm:$0xff]   ;;  %v2512_v55 = vld [vmem:[#allocation11 + $0x6c] ss:$16 sps:$4 sm:$0xff]  }
  0x74   : > { %677 = vmatprep.subr.bf16.mxu0 %v1902_v19  ;;  %730 = vmatprep.subr.bf16.mxu1 %v1904_v20  ;;  %v2506_v53 = vld [vmem:[#allocation11 + $0x88] ss:$16 sps:$4 sm:$0xff]   ;;  %v2510_v54 = vld [vmem:[#allocation11 + $0x64] ss:$16 sps:$4 sm:$0xff]   ;;  %v823_v56 = vld [vmem:[%s2783_s0] sm:$0xff]  ;;  %v487_v15 = vsub.s32 2, %v478_v14 }
  0x75   : > { %v2519_v57 = vsub.s32 %v823_v56, %v825_v51  ;;  %v2523_v58 = vld [vmem:[#allocation11 + $0x60] ss:$16 sps:$4 sm:$0xff]   ;;  %v2525_v59 = vld [vmem:[#allocation11 + $0x68] ss:$16 sps:$4 sm:$0xff]   ;;  %v2531_v60 = vld [vmem:[#allocation11 + $0x44] ss:$16 sps:$4 sm:$0xff]  }
  0x76   : > { %v2533_v61 = vld [vmem:[#allocation11 + $0x4c] ss:$16 sps:$4 sm:$0xff]   ;;  %v2539_v0 = vld [vmem:[#allocation11 + $0x40] ss:$16 sps:$4 sm:$0xff]   ;;  %v2541_v1 = vld [vmem:[#allocation11 + $0x48] ss:$16 sps:$4 sm:$0xff]  }
  0x77   : > { %678 = vmatpush1.bf16.msra.mxu0 %v1906_v21  ;;  %731 = vmatpush1.bf16.msra.mxu1 %v1907_v22  ;;  %vm1104_vm0 = vcmp.gt.s32.totalorder %v2519_v57, 0  ;;  %vm1228_vm1 = vcmp.gt.s32.totalorder %v2519_v57, 1  ;;  %v2545_v2 = vld [vmem:[#allocation11 + $0x24] ss:$16 sps:$4 sm:$0xff]   ;;  %v2547_v3 = vld [vmem:[#allocation11 + $0x2c] ss:$16 sps:$4 sm:$0xff]  }
  0x78   : > { %679 = vmatprep.subr.bf16.mxu0 %v1908_v23  ;;  %732 = vmatprep.subr.bf16.mxu1 %v1910_v24  ;;  %v1105_v62 = vsel %vm1104_vm0, 1, %v2796_v4  ;;  %v1229_v63 = vsel %vm1228_vm1, 1, %v2796_v4  ;;  %v2551_v5 = vld [vmem:[#allocation11 + $0x20] ss:$16 sps:$4 sm:$0xff]   ;;  %v2553_v6 = vld [vmem:[#allocation11 + $0x28] ss:$16 sps:$4 sm:$0xff]  }
  0x79   : > { %1107 = vperm.xlu0 %1876, %v1105_v62   ;;  %v2557_v7 = vld [vmem:[#allocation11 + $0x4] ss:$16 sps:$4 sm:$0xff]   ;;  %v2559_v8 = vld [vmem:[#allocation11 + $0xc] ss:$16 sps:$4 sm:$0xff]   ;;  %v2563_v9 = vld [vmem:[#allocation11] ss:$16 sps:$4 sm:$0xff]  }
  0x7a   : > { %v2565_v10 = vld [vmem:[#allocation11 + $0x8] ss:$16 sps:$4 sm:$0xff]   ;;  %v2567_v11 = vld [vmem:[#allocation3] sm:$0xff]  ;;  %v479_v16 = vsub.s32 0, %v478_v14  ;;  %v491_v17 = vsub.s32 3, %v478_v14  ;;  %v483_v21 = vsub.s32 1, %v478_v14 }
  0x7b   : > { %680 = vmatpush1.bf16.msra.mxu0 %v1912_v25  ;;  %733 = vmatpush1.bf16.msra.mxu1 %v1913_v26  ;;  %v833_v12 = vpack.c.bf16 %v2567_v11, %v2567_v11  ;;  %v475_v18 = vld [vmem:[#allocation10] sm:$0xf]  ;;  %vm1352_vm3 = vcmp.gt.s32.totalorder %v2519_v57, 2  ;;  %vm1476_vm4 = vcmp.gt.s32.totalorder %v2519_v57, 3 }
  0x7c   : > { %681 = vmatprep.subr.bf16.mxu0 %v1914_v27  ;;  %734 = vmatprep.subr.bf16.mxu1 %v1916_v28  ;;  %v488_v22 = vrot.slane %v475_v18, %v487_v15  ;;  %v480_v25 = vrot.slane %v475_v18, %v479_v16  ;;  %v492_v26 = vrot.slane %v475_v18, %v491_v17 }
  0x7d   : > { %1231 = vperm.xlu0 %1876, %v1229_v63  }
  0x7f   : > { %682 = vmatpush1.bf16.msra.mxu0 %v1918_v29  ;;  %735 = vmatpush1.bf16.msra.mxu1 %v1919_v30  ;;  %v484_v29 = vrot.slane %v475_v18, %v483_v21 }
  0x80   : > { %683 = vmatprep.subr.bf16.mxu0 %v1920_v31  ;;  %736 = vmatprep.subr.bf16.mxu1 %v1922_v32 }
  0x83   : > { %684 = vmatpush1.bf16.msra.mxu0 %v1924_v33  ;;  %737 = vmatpush1.bf16.msra.mxu1 %v1925_v34 }
  0x84   : > { %994 = vmatprep.subr.bf16.mxu0 %v2457_v35  ;;  %1035 = vmatprep.subr.bf16.mxu1 %v2459_v36 }
  0x86   : > { %702 = vmatmul.mubr.bf16.vlgmr.msra.gmra.mxu0 %v1926_v37  ;;  %755 = vmatmul.mubr.bf16.vlgmr.msra.gmra.mxu1 %v1926_v37 }
  0x87   : > { %995 = vmatpush1.bf16.msra.mxu0 %v2463_v38  ;;  %1036 = vmatpush1.bf16.msra.mxu1 %v2465_v39 }
  0x88   : > { %996 = vmatprep.subr.bf16.mxu0 %v2467_v40  ;;  %1037 = vmatprep.subr.bf16.mxu1 %v2471_v41 }
  0x89   : > { %711 = vmatprep.mubr.bf16.mxu0 %v2796_v4  ;;  %764 = vmatprep.mubr.bf16.mxu1 %v2796_v4 }
  0x8b   : > { %997 = vmatpush1.bf16.msra.mxu0 %v2473_v42  ;;  %1038 = vmatpush1.bf16.msra.mxu1 %v2475_v43 }
  0x8c   : > { %998 = vmatprep.subr.bf16.mxu0 %v2479_v44  ;;  %1039 = vmatprep.subr.bf16.mxu1 %v2483_v45 }
  0x8e   : > { %712 = vmatmul.mubr.bf16.gmra.mxu0 %v1957_v47  ;;  %765 = vmatmul.mubr.bf16.gmra.mxu1 %v1957_v47 }
  0x8f   : > { %999 = vmatpush1.bf16.msra.mxu0 %v2485_v46  ;;  %1040 = vmatpush1.bf16.msra.mxu1 %v2493_v48 }
  0x90   : > { %1000 = vmatprep.subr.bf16.mxu0 %v2498_v49  ;;  %1041 = vmatprep.subr.bf16.mxu1 %v2500_v50 }
  0x91   : > { %1026 = vmatprep.mubr.bf16.mxu0 %v2796_v4  ;;  %1067 = vmatprep.mubr.bf16.mxu1 %v2796_v4 }
  0x93   : > { %1001 = vmatpush1.bf16.msra.mxu0 %v2504_v52  ;;  %1042 = vmatpush1.bf16.msra.mxu1 %v2506_v53 }
  0x94   : > { %1002 = vmatprep.subr.bf16.mxu0 %v2510_v54  ;;  %1043 = vmatprep.subr.bf16.mxu1 %v2512_v55 }
  0x97   : > { %1003 = vmatpush1.bf16.msra.mxu0 %v2523_v58  ;;  %1044 = vmatpush1.bf16.msra.mxu1 %v2525_v59 }
  0x98   : > { %1004 = vmatprep.subr.bf16.mxu0 %v2531_v60  ;;  %1045 = vmatprep.subr.bf16.mxu1 %v2533_v61 }
  0x9b   : > { %1005 = vmatpush1.bf16.msra.mxu0 %v2539_v0  ;;  %1046 = vmatpush1.bf16.msra.mxu1 %v2541_v1 }
  0x9c   : > { %1006 = vmatprep.subr.bf16.mxu0 %v2545_v2  ;;  %1047 = vmatprep.subr.bf16.mxu1 %v2547_v3 }
  0x9f   : > { %1007 = vmatpush1.bf16.msra.mxu0 %v2551_v5  ;;  %1048 = vmatpush1.bf16.msra.mxu1 %v2553_v6 }
  0xa0   : > { %1008 = vmatprep.subr.bf16.mxu0 %v2557_v7  ;;  %1049 = vmatprep.subr.bf16.mxu1 %v2559_v8 }
  0xa3   : > { %1009 = vmatpush1.bf16.msra.mxu0 %v2563_v9  ;;  %1050 = vmatpush1.bf16.msra.mxu1 %v2565_v10 }
  0xa4   : > { %1118 = vmatprep.subr.bf16.mxu0 %v2457_v35  ;;  %1159 = vmatprep.subr.bf16.mxu1 %v2459_v36 }
  0xa6   : > { %1027 = vmatmul.mubr.bf16.vlgmr.msra.gmra.mxu0 %v833_v12  ;;  %1068 = vmatmul.mubr.bf16.vlgmr.msra.gmra.mxu1 %v833_v12 }
  0xa7   : > { %1119 = vmatpush1.bf16.msra.mxu0 %v2463_v38  ;;  %1160 = vmatpush1.bf16.msra.mxu1 %v2465_v39 }
  0xa8   : > { %1120 = vmatprep.subr.bf16.mxu0 %v2467_v40  ;;  %1161 = vmatprep.subr.bf16.mxu1 %v2471_v41 }
  0xa9   : > { %1150 = vmatprep.mubr.bf16.mxu0 %v2796_v4  ;;  %1191 = vmatprep.mubr.bf16.mxu1 %v2796_v4 }
  0xab   : > { %1121 = vmatpush1.bf16.msra.mxu0 %v2473_v42  ;;  %1162 = vmatpush1.bf16.msra.mxu1 %v2475_v43 }
  0xac   : > { %1122 = vmatprep.subr.bf16.mxu0 %v2479_v44  ;;  %1163 = vmatprep.subr.bf16.mxu1 %v2483_v45 }
  0xaf   : > { %1123 = vmatpush1.bf16.msra.mxu0 %v2485_v46  ;;  %1164 = vmatpush1.bf16.msra.mxu1 %v2493_v48 }
  0xb0   : > { %1124 = vmatprep.subr.bf16.mxu0 %v2498_v49  ;;  %1165 = vmatprep.subr.bf16.mxu1 %v2500_v50 }
  0xb3   : > { %1125 = vmatpush1.bf16.msra.mxu0 %v2504_v52  ;;  %1166 = vmatpush1.bf16.msra.mxu1 %v2506_v53 }
  0xb4   : > { %1126 = vmatprep.subr.bf16.mxu0 %v2510_v54  ;;  %1167 = vmatprep.subr.bf16.mxu1 %v2512_v55 }
  0xb7   : > { %1127 = vmatpush1.bf16.msra.mxu0 %v2523_v58  ;;  %1168 = vmatpush1.bf16.msra.mxu1 %v2525_v59 }
  0xb8   : > { %1128 = vmatprep.subr.bf16.mxu0 %v2531_v60  ;;  %1169 = vmatprep.subr.bf16.mxu1 %v2533_v61 }
  0xbb   : > { %1129 = vmatpush1.bf16.msra.mxu0 %v2539_v0  ;;  %1170 = vmatpush1.bf16.msra.mxu1 %v2541_v1 }
  0xbc   : > { %1130 = vmatprep.subr.bf16.mxu0 %v2545_v2  ;;  %1171 = vmatprep.subr.bf16.mxu1 %v2547_v3 }
  0xbf   : > { %1131 = vmatpush1.bf16.msra.mxu0 %v2551_v5  ;;  %1172 = vmatpush1.bf16.msra.mxu1 %v2553_v6 }
  0xc0   : > { %1132 = vmatprep.subr.bf16.mxu0 %v2557_v7  ;;  %1173 = vmatprep.subr.bf16.mxu1 %v2559_v8 }
  0xc3   : > { %1133 = vmatpush1.bf16.msra.mxu0 %v2563_v9  ;;  %1174 = vmatpush1.bf16.msra.mxu1 %v2565_v10 }
  0xc4   : > { %1242 = vmatprep.subr.bf16.mxu0 %v2457_v35  ;;  %1283 = vmatprep.subr.bf16.mxu1 %v2459_v36 }
 0x146   : > { %v703_v19 = vpop.f32.mrf.mxu0  ;;  %v756_v20 = vpop.f32.mrf.mxu1 }
 0x148   : > { %v705_v23 = vpop.f32.mrf.mxu0  ;;  %v758_v24 = vpop.f32.mrf.mxu1 }
 0x149   : > { %v706_v4 = vadd.f32 %v705_v23, %v484_v29 }
 0x14a   : > { %v707_v27 = vpop.f32.mrf.mxu0  ;;  %v760_v28 = vpop.f32.mrf.mxu1 }
 0x14b   : > { %v2611_v30 = vadd.f32 %v707_v27, %v480_v25  ;;  %v2613_v31 = vadd.f32 %v760_v28, %v488_v22 }
 0x14c   : > { %v709_v32 = vpop.f32.mrf.mxu0  ;;  %v762_v33 = vpop.f32.mrf.mxu1 }
 0x14d   : > { %2805 = vst [vmem:[#allocation21_spill] sm:$0xff] %v2613_v31  ;;  %v2615_v34 = vadd.f32 %v709_v32, %v484_v29  ;;  %v2617_v37 = vadd.f32 %v762_v33, %v492_v26  ;;  %v704_v33 = vadd.f32 %v703_v19, %v480_v25 }
 0x14e   : > { %v713_v47 = vpop.f32.mrf.mxu0  ;;  %v766_v51 = vpop.f32.mrf.mxu1 }
 0x14f   : > { %v2619_v56 = vadd.f32 %v713_v47, %v480_v25  ;;  %v2621_v62 = vadd.f32 %v766_v51, %v488_v22 }
 0x150   : > { %v715_v63 = vpop.f32.mrf.mxu0  ;;  %v768_v12 = vpop.f32.mrf.mxu1 }
 0x151   : > { %2806 = vst [vmem:[#allocation22_spill] sm:$0xff] %v2619_v56  ;;  %2807 = vst [vmem:[#allocation23_spill] sm:$0xff] %v2621_v62  ;;  %v2623_v13 = vadd.f32 %v715_v63, %v484_v29  ;;  %v2625_v14 = vadd.f32 %v768_v12, %v492_v26 }
 0x152   : > { %v717_v15 = vpop.f32.mrf.mxu0  ;;  %v770_v16 = vpop.f32.mrf.mxu1 }
 0x153   : > { %2808 = vst [vmem:[#allocation24_spill] sm:$0xff] %v2623_v13  ;;  %2809 = vst [vmem:[#allocation25_spill] sm:$0xff] %v2625_v14  ;;  %v2627_v17 = vadd.f32 %v717_v15, %v480_v25  ;;  %v2629_v18 = vadd.f32 %v770_v16, %v488_v22 }
 0x154   : > { %v719_v21 = vpop.f32.mrf.mxu0  ;;  %v772_v27 = vpop.f32.mrf.mxu1 }
 0x155   : > { %2810 = vst [vmem:[#allocation26_spill] sm:$0xff] %v2627_v17  ;;  %2811 = vst [vmem:[#allocation27_spill] sm:$0xff] %v2629_v18  ;;  %v2631_v28 = vadd.f32 %v719_v21, %v484_v29  ;;  %v2633_v32 = vadd.f32 %v772_v27, %v492_v26  ;;  %v759_v21 = vadd.f32 %v758_v24, %v492_v26 }
 0x156   : > { %v757_v27 = vadd.f32 %v756_v20, %v488_v22 }
 0x157   : > { %2812 = vst [vmem:[#allocation28_spill] sm:$0xff] %v2631_v28  ;;  %2813 = vst [vmem:[#allocation29_spill] sm:$0xff] %v2633_v32 }
 0x166   : > { %v1028_v47 = vpop.f32.mrf.mxu0  ;;  %v1069_v51 = vpop.f32.mrf.mxu1 }
 0x167   : > { %v1076_v63 = vadd.f32 %v1028_v47, %v704_v33  ;;  %v1078_v25 = vadd.f32 %v1069_v51, %v757_v27  ;;  %v2814_v51 = vmov 0  }
 0x168   : > { %v1030_v62 = vpop.f32.mrf.mxu0  ;;  %v1071_v12 = vpop.f32.mrf.mxu1 }
 0x169   : > { %v1751_v14 = vmul.f32 -1.442695, %v1076_v63  ;;  %v1077_v13 = vadd.f32 %v1030_v62, %v706_v4  ;;  %v1079_v28 = vadd.f32 %v1071_v12, %v759_v21  ;;  %v828_v62 = vld [vmem:[#allocation4] sm:$0xff]  ;;  %v1477_v63 = vsel %vm1476_vm4, 1, %v2814_v51 }
 0x16a   : > { %v1032_v56 = vpop.f32.mrf.mxu0  ;;  %v1073_v15 = vpop.f32.mrf.mxu1 }
 0x16b   : > { %1976 = vpow2.f32 %v1751_v14  ;;  %v1752_v16 = vmul.f32 -1.442695, %v1077_v13  ;;  %v1753_v32 = vmul.f32 -1.442695, %v1079_v28  ;;  %v1108_v14 = vpop.permute.xlu0 %1107 }
 0x16c   : > { %v1033_v18 = vpop.f32.mrf.mxu0  ;;  %v1074_v17 = vpop.f32.mrf.mxu1  ;;  %vm1109_vm2 = vcmp.eq.s32.totalorder %v1108_v14, 1 }
 0x16d   : > { %1978 = vpow2.f32 %v1752_v16 }
 0x16e   : > { %1980 = vpow2.f32 %v1753_v32 }
 0x178   : > { %v1977_v19 = vpop.eup %1976 }
 0x179   : > { %v1083_v31 = vadd.f32 1.0, %v1977_v19 }
 0x17a   : > { %v1979_v23 = vpop.eup %1978 }
 0x17b   : > { %1982 = vrcp.f32 %v1083_v31  ;;  %v1089_v29 = vadd.f32 1.0, %v1979_v23  ;;  %v1981_v4 = vpop.eup %1980 }
 0x17c   : > { %1984 = vtanh.f32 %v1078_v25  ;;  %v1096_v18 = vadd.f32 1.0, %v1981_v4 }
 0x17d   : > { %1986 = vrcp.f32 %v1089_v29 }
 0x17e   : > { %1988 = vrcp.f32 %v1096_v18 }
 0x188   : > { %v1983_v56 = vpop.eup %1982 }
 0x189   : > { %v1985_v13 = vpop.eup %1984 }
 0x18a   : > { %v1987_v17 = vpop.eup %1986  ;;  %v1100_v26 = vmul.f32 %v1985_v13, %v1983_v56  ;;  %v2815_v56 = vld [vmem:[#allocation21_spill] sm:$0xff] }
 0x18b   : > { %v1099_v24 = vmul.f32 %v1987_v17, %v828_v62  ;;  %v1989_v28 = vpop.eup %1988 }
 0x18d   : > { %v1101_v20 = vadd.f32 %v1100_v26, %v1099_v24 }
 0x18f   : > { %1990 = vtanh.f32 %v1101_v20  ;;  %v2635_v22 = vsel %vm1109_vm2, %v1101_v20, %v828_v62 }
 0x19c   : > { %v1991_v31 = vpop.eup %1990 }
 0x19d   : > { %v1103_v32 = vmul.f32 %v1991_v31, %v1989_v28 }
 0x19f   : > { %v2638_v33 = vsel %vm1109_vm2, %v1103_v32, %v2567_v11  ;;  %v1353_v11 = vsel %vm1352_vm3, 1, %v2814_v51  ;;  %v1232_v32 = vpop.permute.xlu0 %1231 }
 0x1a0   : > { %v1117_v47 = vpack.c.bf16 %v2638_v33, %v2638_v33  ;;  %1355 = vperm.xlu1 %1877, %v1353_v11   ;;  %vm1233_vm5 = vcmp.eq.s32.totalorder %v1232_v32, 1 }
 0x1a2   : > { %1151 = vmatmul.mubr.bf16.vlgmr.msra.gmra.mxu0 %v1117_v47  ;;  %1192 = vmatmul.mubr.bf16.vlgmr.msra.gmra.mxu1 %v1117_v47 }
 0x1a3   : > { %1243 = vmatpush1.bf16.msra.mxu0 %v2463_v38  ;;  %1284 = vmatpush1.bf16.msra.mxu1 %v2465_v39 }
 0x1a4   : > { %1244 = vmatprep.subr.bf16.mxu0 %v2467_v40  ;;  %1285 = vmatprep.subr.bf16.mxu1 %v2471_v41 }
 0x1a5   : > { %1274 = vmatprep.mubr.bf16.mxu0 %v2814_v51  ;;  %1315 = vmatprep.mubr.bf16.mxu1 %v2814_v51 }
 0x1a6   : > { %1479 = vperm.xlu1 %1877, %v1477_v63  }
 0x1a7   : > { %1245 = vmatpush1.bf16.msra.mxu0 %v2473_v42  ;;  %1286 = vmatpush1.bf16.msra.mxu1 %v2475_v43 }
 0x1a8   : > { %1246 = vmatprep.subr.bf16.mxu0 %v2479_v44  ;;  %1287 = vmatprep.subr.bf16.mxu1 %v2483_v45 }
 0x1ab   : > { %1247 = vmatpush1.bf16.msra.mxu0 %v2485_v46  ;;  %1288 = vmatpush1.bf16.msra.mxu1 %v2493_v48 }
 0x1ac   : > { %1248 = vmatprep.subr.bf16.mxu0 %v2498_v49  ;;  %1289 = vmatprep.subr.bf16.mxu1 %v2500_v50 }
 0x1af   : > { %1249 = vmatpush1.bf16.msra.mxu0 %v2504_v52  ;;  %1290 = vmatpush1.bf16.msra.mxu1 %v2506_v53 }
 0x1b0   : > { %1250 = vmatprep.subr.bf16.mxu0 %v2510_v54  ;;  %1291 = vmatprep.subr.bf16.mxu1 %v2512_v55 }
 0x1b3   : > { %1251 = vmatpush1.bf16.msra.mxu0 %v2523_v58  ;;  %1292 = vmatpush1.bf16.msra.mxu1 %v2525_v59 }
 0x1b4   : > { %1252 = vmatprep.subr.bf16.mxu0 %v2531_v60  ;;  %1293 = vmatprep.subr.bf16.mxu1 %v2533_v61 }
 0x1b7   : > { %1253 = vmatpush1.bf16.msra.mxu0 %v2539_v0  ;;  %1294 = vmatpush1.bf16.msra.mxu1 %v2541_v1 }
 0x1b8   : > { %1254 = vmatprep.subr.bf16.mxu0 %v2545_v2  ;;  %1295 = vmatprep.subr.bf16.mxu1 %v2547_v3 }
 0x1bb   : > { %1255 = vmatpush1.bf16.msra.mxu0 %v2551_v5  ;;  %1296 = vmatpush1.bf16.msra.mxu1 %v2553_v6 }
 0x1bc   : > { %1256 = vmatprep.subr.bf16.mxu0 %v2557_v7  ;;  %1297 = vmatprep.subr.bf16.mxu1 %v2559_v8 }
 0x1bf   : > { %1257 = vmatpush1.bf16.msra.mxu0 %v2563_v9  ;;  %1298 = vmatpush1.bf16.msra.mxu1 %v2565_v10 }
 0x1c0   : > { %1366 = vmatprep.subr.bf16.mxu0 %v2457_v35  ;;  %1407 = vmatprep.subr.bf16.mxu1 %v2459_v36 }
 0x262   : > { %v1152_v12 = vpop.f32.mrf.mxu0  ;;  %v1193_v15 = vpop.f32.mrf.mxu1 }
 0x263   : > { %v1200_v16 = vadd.f32 %v1152_v12, %v2611_v30  ;;  %v1202_v62 = vadd.f32 %v1193_v15, %v2815_v56 }
 0x264   : > { %v1154_v21 = vpop.f32.mrf.mxu0  ;;  %v1195_v27 = vpop.f32.mrf.mxu1 }
 0x265   : > { %v1754_v19 = vmul.f32 -1.442695, %v1200_v16  ;;  %v1201_v35 = vadd.f32 %v1154_v21, %v2615_v34  ;;  %v1203_v4 = vadd.f32 %v1195_v27, %v2617_v37 }
 0x266   : > { %v1156_v36 = vpop.f32.mrf.mxu0  ;;  %v1197_v25 = vpop.f32.mrf.mxu1 }
 0x267   : > { %1992 = vpow2.f32 %v1754_v19  ;;  %v1755_v23 = vmul.f32 -1.442695, %v1201_v35  ;;  %v1756_v13 = vmul.f32 -1.442695, %v1203_v4 }
 0x268   : > { %v1157_v57 = vpop.f32.mrf.mxu0  ;;  %v1198_v29 = vpop.f32.mrf.mxu1 }
 0x269   : > { %1994 = vpow2.f32 %v1755_v23  ;;  %v2820_v29 = vld [vmem:[#allocation26_spill] sm:$0xff] }
 0x26a   : > { %1996 = vtanh.f32 %v1202_v62 }
 0x26b   : > { %1998 = vpow2.f32 %v1756_v13 }
 0x274   : > { %v1993_v14 = vpop.eup %1992 }
 0x275   : > { %v1207_v17 = vadd.f32 1.0, %v1993_v14  ;;  %v2821_v14 = vld [vmem:[#allocation28_spill] sm:$0xff] }
 0x276   : > { %v1995_v30 = vpop.eup %1994 }
 0x277   : > { %2000 = vrcp.f32 %v1207_v17  ;;  %v1213_v18 = vadd.f32 1.0, %v1995_v30  ;;  %v1997_v34 = vpop.eup %1996 }
 0x278   : > { %v1999_v24 = vpop.eup %1998 }
 0x279   : > { %2002 = vrcp.f32 %v1213_v18  ;;  %v1220_v31 = vadd.f32 1.0, %v1999_v24 }
 0x27b   : > { %2004 = vrcp.f32 %v1220_v31  ;;  %v2823_v31 = vld [vmem:[#allocation27_spill] sm:$0xff] }
 0x284   : > { %v2001_v26 = vpop.eup %2000 }
 0x285   : > { %v1224_v20 = vmul.f32 %v2001_v26, %v1997_v34 }
 0x286   : > { %v2003_v28 = vpop.eup %2002 }
 0x287   : > { %v1223_v37 = vmul.f32 %v2003_v28, %v2635_v22 }
 0x288   : > { %v2005_v63 = vpop.eup %2004 }
 0x289   : > { %v1225_v47 = vadd.f32 %v1224_v20, %v1223_v37  ;;  %v2822_v20 = vld [vmem:[#allocation29_spill] sm:$0xff] }
 0x28b   : > { %2006 = vtanh.f32 %v1225_v47  ;;  %v2686_v11 = vsel %vm1233_vm5, %v1225_v47, %v2635_v22 }
 0x298   : > { %v2007_v12 = vpop.eup %2006 }
 0x299   : > { %v1227_v15 = vmul.f32 %v2007_v12, %v2005_v63 }
 0x29b   : > { %v2689_v16 = vsel %vm1233_vm5, %v1227_v15, %v2638_v33 }
 0x29c   : > { %v1241_v21 = vpack.c.bf16 %v2689_v16, %v2689_v16 }
 0x29e   : > { %1275 = vmatmul.mubr.bf16.vlgmr.msra.gmra.mxu0 %v1241_v21  ;;  %1316 = vmatmul.mubr.bf16.vlgmr.msra.gmra.mxu1 %v1241_v21 }
 0x29f   : > { %1367 = vmatpush1.bf16.msra.mxu0 %v2463_v38  ;;  %1408 = vmatpush1.bf16.msra.mxu1 %v2465_v39 }
 0x2a0   : > { %1368 = vmatprep.subr.bf16.mxu0 %v2467_v40  ;;  %1409 = vmatprep.subr.bf16.mxu1 %v2471_v41  ;;  %v2816_v40 = vld [vmem:[#allocation22_spill] sm:$0xff] }
 0x2a1   : > { %1398 = vmatprep.mubr.bf16.mxu0 %v2814_v51  ;;  %1439 = vmatprep.mubr.bf16.mxu1 %v2814_v51 }
 0x2a3   : > { %1369 = vmatpush1.bf16.msra.mxu0 %v2473_v42  ;;  %1410 = vmatpush1.bf16.msra.mxu1 %v2475_v43 }
 0x2a4   : > { %1370 = vmatprep.subr.bf16.mxu0 %v2479_v44  ;;  %1411 = vmatprep.subr.bf16.mxu1 %v2483_v45  ;;  %v2817_v45 = vld [vmem:[#allocation24_spill] sm:$0xff] }
 0x2a7   : > { %1371 = vmatpush1.bf16.msra.mxu0 %v2485_v46  ;;  %1412 = vmatpush1.bf16.msra.mxu1 %v2493_v48 }
 0x2a8   : > { %1372 = vmatprep.subr.bf16.mxu0 %v2498_v49  ;;  %1413 = vmatprep.subr.bf16.mxu1 %v2500_v50 }
 0x2ab   : > { %1373 = vmatpush1.bf16.msra.mxu0 %v2504_v52  ;;  %1414 = vmatpush1.bf16.msra.mxu1 %v2506_v53 }
 0x2ac   : > { %1374 = vmatprep.subr.bf16.mxu0 %v2510_v54  ;;  %1415 = vmatprep.subr.bf16.mxu1 %v2512_v55  ;;  %v2818_v54 = vld [vmem:[#allocation25_spill] sm:$0xff] }
 0x2af   : > { %1375 = vmatpush1.bf16.msra.mxu0 %v2523_v58  ;;  %1416 = vmatpush1.bf16.msra.mxu1 %v2525_v59  ;;  %v2819_v58 = vld [vmem:[#allocation23_spill] sm:$0xff] }
 0x2b0   : > { %1376 = vmatprep.subr.bf16.mxu0 %v2531_v60  ;;  %1417 = vmatprep.subr.bf16.mxu1 %v2533_v61 }
 0x2b3   : > { %1377 = vmatpush1.bf16.msra.mxu0 %v2539_v0  ;;  %1418 = vmatpush1.bf16.msra.mxu1 %v2541_v1 }
 0x2b4   : > { %1378 = vmatprep.subr.bf16.mxu0 %v2545_v2  ;;  %1419 = vmatprep.subr.bf16.mxu1 %v2547_v3 }
 0x2b7   : > { %1379 = vmatpush1.bf16.msra.mxu0 %v2551_v5  ;;  %1420 = vmatpush1.bf16.msra.mxu1 %v2553_v6 }
 0x2b8   : > { %1380 = vmatprep.subr.bf16.mxu0 %v2557_v7  ;;  %1421 = vmatprep.subr.bf16.mxu1 %v2559_v8  ;;  %v1356_v7 = vpop.permute.xlu1 %1355 }
 0x2b9   : > { %vm1357_vm6 = vcmp.eq.s32.totalorder %v1356_v7, 1 }
 0x2bb   : > { %1381 = vmatpush1.bf16.msra.mxu0 %v2563_v9  ;;  %1422 = vmatpush1.bf16.msra.mxu1 %v2565_v10 }
 0x35e   : > { %v1276_v38 = vpop.f32.mrf.mxu0  ;;  %v1317_v39 = vpop.f32.mrf.mxu1 }
 0x35f   : > { %v1324_v41 = vadd.f32 %v1276_v38, %v2816_v40  ;;  %v1326_v59 = vadd.f32 %v1317_v39, %v2819_v58 }
 0x360   : > { %v1278_v42 = vpop.f32.mrf.mxu0  ;;  %v1319_v43 = vpop.f32.mrf.mxu1 }
 0x361   : > { %v1757_v44 = vmul.f32 -1.442695, %v1324_v41  ;;  %v1325_v46 = vadd.f32 %v1278_v42, %v2817_v45  ;;  %v1327_v55 = vadd.f32 %v1319_v43, %v2818_v54  ;;  %v1480_v41 = vpop.permute.xlu1 %1479 }
 0x362   : > { %v1280_v48 = vpop.f32.mrf.mxu0  ;;  %v1321_v49 = vpop.f32.mrf.mxu1  ;;  %vm1481_vm7 = vcmp.eq.s32.totalorder %v1480_v41, 1 }
 0x363   : > { %2008 = vpow2.f32 %v1757_v44  ;;  %v1758_v50 = vmul.f32 -1.442695, %v1325_v46  ;;  %v1759_v60 = vmul.f32 -1.442695, %v1327_v55 }
 0x364   : > { %v1281_v52 = vpop.f32.mrf.mxu0  ;;  %v1322_v53 = vpop.f32.mrf.mxu1 }
 0x365   : > { %2010 = vpow2.f32 %v1758_v50 }
 0x366   : > { %2012 = vtanh.f32 %v1326_v59 }
 0x367   : > { %2014 = vpow2.f32 %v1759_v60 }
 0x370   : > { %v2009_v61 = vpop.eup %2008 }
 0x371   : > { %v1331_v0 = vadd.f32 1.0, %v2009_v61 }
 0x372   : > { %v2011_v1 = vpop.eup %2010 }
 0x373   : > { %2016 = vrcp.f32 %v1331_v0  ;;  %v1337_v2 = vadd.f32 1.0, %v2011_v1  ;;  %v2013_v3 = vpop.eup %2012 }
 0x374   : > { %v2015_v5 = vpop.eup %2014 }
 0x375   : > { %2018 = vrcp.f32 %v1337_v2  ;;  %v1344_v10 = vadd.f32 1.0, %v2015_v5 }
 0x377   : > { %2020 = vrcp.f32 %v1344_v10 }
 0x380   : > { %v2017_v6 = vpop.eup %2016 }
 0x381   : > { %v1348_v8 = vmul.f32 %v2017_v6, %v2013_v3 }
 0x382   : > { %v2019_v9 = vpop.eup %2018 }
 0x383   : > { %v1347_v22 = vmul.f32 %v2019_v9, %v2686_v11 }
 0x384   : > { %v2021_v27 = vpop.eup %2020 }
 0x385   : > { %v1349_v33 = vadd.f32 %v1348_v8, %v1347_v22 }
 0x387   : > { %2022 = vtanh.f32 %v1349_v33  ;;  %v1359_v51 = vsel %vm1357_vm6, %v1349_v33, %v2686_v11 }
 0x394   : > { %v2023_v19 = vpop.eup %2022 }
 0x395   : > { %v1351_v35 = vmul.f32 %v2023_v19, %v2021_v27 }
 0x397   : > { %v1358_v36 = vsel %vm1357_vm6, %v1351_v35, %v2689_v16 }
 0x398   : > { %v1365_v25 = vpack.c.bf16 %v1358_v36, %v1358_v36 }
 0x39a   : > { %1399 = vmatmul.mubr.bf16.vlgmr.msra.gmra.mxu0 %v1365_v25  ;;  %1440 = vmatmul.mubr.bf16.vlgmr.msra.gmra.mxu1 %v1365_v25 }
 0x45a   : > { %v1400_v23 = vpop.f32.mrf.mxu0  ;;  %v1441_v57 = vpop.f32.mrf.mxu1 }
 0x45b   : > { %v1448_v4 = vadd.f32 %v1400_v23, %v2820_v29  ;;  %v1450_v32 = vadd.f32 %v1441_v57, %v2823_v31 }
 0x45c   : > { %v1402_v56 = vpop.f32.mrf.mxu0  ;;  %v1443_v62 = vpop.f32.mrf.mxu1 }
 0x45d   : > { %v1760_v13 = vmul.f32 -1.442695, %v1448_v4  ;;  %v1449_v17 = vadd.f32 %v1402_v56, %v2821_v14  ;;  %v1451_v28 = vadd.f32 %v1443_v62, %v2822_v20 }
 0x45e   : > { %v1404_v30 = vpop.f32.mrf.mxu0  ;;  %v1445_v18 = vpop.f32.mrf.mxu1 }
 0x45f   : > { %2024 = vpow2.f32 %v1760_v13  ;;  %v1761_v34 = vmul.f32 -1.442695, %v1449_v17  ;;  %v1762_v37 = vmul.f32 -1.442695, %v1451_v28 }
 0x460   : > { %v1405_v24 = vpop.f32.mrf.mxu0  ;;  %v1446_v26 = vpop.f32.mrf.mxu1 }
 0x461   : > { %2026 = vpow2.f32 %v1761_v34 }
 0x462   : > { %2028 = vtanh.f32 %v1450_v32 }
 0x463   : > { %2030 = vpow2.f32 %v1762_v37 }
 0x46c   : > { %v2025_v47 = vpop.eup %2024 }
 0x46d   : > { %v1455_v11 = vadd.f32 1.0, %v2025_v47 }
 0x46e   : > { %v2027_v63 = vpop.eup %2026 }
 0x46f   : > { %2032 = vrcp.f32 %v1455_v11  ;;  %v1461_v12 = vadd.f32 1.0, %v2027_v63  ;;  %v2029_v15 = vpop.eup %2028 }
 0x470   : > { %v2031_v16 = vpop.eup %2030 }
 0x471   : > { %2034 = vrcp.f32 %v1461_v12  ;;  %v1468_v40 = vadd.f32 1.0, %v2031_v16 }
 0x473   : > { %2036 = vrcp.f32 %v1468_v40 }
 0x47c   : > { %v2033_v21 = vpop.eup %2032 }
 0x47d   : > { %v1472_v38 = vmul.f32 %v2033_v21, %v2029_v15 }
 0x47e   : > { %v2035_v39 = vpop.eup %2034 }
 0x47f   : > { %v1471_v42 = vmul.f32 %v2035_v39, %v1359_v51 }
 0x480   : > { %v2037_v45 = vpop.eup %2036 }
 0x481   : > { %v1473_v43 = vadd.f32 %v1472_v38, %v1471_v42 }
 0x483   : > { %2038 = vtanh.f32 %v1473_v43  ;;  %v1483_v44 = vsel %vm1481_vm7, %v1473_v43, %v1359_v51 }
 0x484   : > { %1485 = vst [vmem:[#allocation4] sm:$0xff] %v1483_v44 }
 0x490   : > { %v2039_v46 = vpop.eup %2038  ;;  %1489 = sbr.rel (%p1763_p12) target bundleno = 1181 (0x49d), region = 72 }
 0x491   : > { %v1475_v48 = vmul.f32 %v2039_v46, %v2037_v45 }
 0x493   : > { %v1482_v49 = vsel %vm1481_vm7, %v1475_v48, %v1358_v36 }
 0x494   : > { %1484 = vst [vmem:[#allocation3] sm:$0xff] %v1482_v49 }
 0x495   : > { %v1492_v52 = vld [vmem:[#allocation4] sm:$0xff] }
 0x496   : > { %1493 = vst [vmem:[#allocation14] sm:$0xff] %v1492_v52 }
 0x49b   : > { %v1490_v50 = vld [vmem:[#allocation3] sm:$0xff] }
 0x49c   : > { %1491 = vst [vmem:[#allocation13] sm:$0xff] %v1490_v50 }
 0x49d PF: > { %s2824_s26 = sadd.s32 4294967295, %s2260_s10   ;;  %s2271_s15 = smov [#allocation13]  }
 0x49e   : > { %p2739_p11 = scmp.eq.s32.totalorder %s2824_s26, 1  ;;  %s1503_s23 = sshll.u32 %s2271_s15, 4  ;;  %s1504_s23 = int_to_ptr.vmem [resolvable:$true] %s1503_s23 }
 0x49f   : > { %s2272_s17 = smov [#allocation14]   ;;  %s2146_s30 = scalar_lea.vmem %s1504_s23, 128 }
 0x4a0   : > { %s1516_s24 = sshll.u32 %s2272_s17, 4  ;;  %p2147_p7 = scmp.ne.s32.totalorder %s1504_s23, %s2146_s30  ;;  %s1517_s24 = int_to_ptr.vmem [resolvable:$true] %s1516_s24 }
 0x4a1   : > { %p2153_p2 = scmp.lt.s32.totalorder %s1504_s23, %s1504_s23  ;;  %p2154_p3 = scmp.lt.s32.totalorder %s2146_s30, %s2146_s30 }
 0x4a2   : > { %p2148_p13 = pnand %p2147_p7, %p2739_p11 }
 0x4a3   : > { %p2155_p6 = por %p2154_p3, %p2153_p2 }
 0x4a4   : > { %p2149_p0 = pneg %p2148_p13 }
 0x4a6   : > { %p2156_p1 = pnand %p2155_p6, %p2149_p0 }
 0x4a8   : > { %2159 = shalt.err (!%p2156_p1)
}
 0x4a9   : > { %1786 = dma.vmem_to_hbm [thread:$0]  (%p2739_p11), %s1504_s23, 128, %s2790_s7, [#allocation7]  }
 0x4aa   : > { %s2170_s11 = scalar_lea.vmem %s1517_s24, 128  ;;  %p2177_p10 = scmp.lt.s32.totalorder %s1517_s24, %s1517_s24 }
 0x4ab   : > { %p2171_p4 = scmp.ne.s32.totalorder %s1517_s24, %s2170_s11  ;;  %p2178_p5 = scmp.lt.s32.totalorder %s2170_s11, %s2170_s11 }
 0x4ad   : > { %p2172_p8 = pnand %p2171_p4, %p2739_p11  ;;  %p2179_p12 = por %p2178_p5, %p2177_p10 }
 0x4af   : > { %p2173_p9 = pneg %p2172_p8 }
 0x4b1   : > { %p2180_p7 = pnand %p2179_p12, %p2173_p9 }
 0x4b3   : > { %2183 = shalt.err (!%p2180_p7)
}
 0x4b4   : > { %1788 = dma.vmem_to_hbm [thread:$0]  (%p2739_p11), %s1517_s24, 128, %s2791_s8, [#allocation15]  }
 0x4b5   : > { %2231 = dma.done.wait (%p2739_p11), [#allocation7], 128  }
 0x4b6   : > { %2233 = vsyncadd (%p2739_p11), [#allocation7], 4294967168 }
 0x4b7   : > { %2235 = dma.done.wait (%p2739_p11), [#allocation15], 128  }
 0x4b8   : > { %2237 = vsyncadd (%p2739_p11), [#allocation15], 4294967168 }
 0x4b9 PF: > { %s26_s10 = sadd.s32 1, %s2260_s10   ;;  %s2826_s27 = smov %s2244_s28 }
 0x4ba   : > { %p23_p13 = scmp.ge.s32.totalorder %s26_s10, 4   ;;  %s2827_s28 = smov %s2248_s29 }
 0x4bb   : > { %s2828_s29 = smov %s2413_s21  ;;  %s2829_s30 = smov %s2256_s9 }
 0x4bc   : > { %s2830_s9 = smov %s2832_s25  ;;  %25 = sbr.rel (!%p23_p13) target bundleno = 8 (0x8), region = 127 }
 0x4c1   :  { %1533 = vsyncpa [#allocation6], 1 }
 0x4c2   :  { %1535 = vsyncpa [#allocation6 + $0x1], 1 }
 0x4c3   :  { %1536 = vsyncpa [#allocation9], 1 }
 0x4c4   :  { %1537 = vsyncpa [#allocation12], 1 }
 0x4c5   :  { %1538 = vsyncpa [#allocation7], 1 }
 0x4c6   :  { %1540 = vsyncpa [#allocation7 + $0x1], 1 }
 0x4c7   :  { %1541 = vsyncpa [#allocation15], 1 }

</bundles_post_ra>
